<compile_context>
chip_gen: v7x
topology: tpu7x:2x2x1
jax: 0.10.0
libtpu: 0.0.40
codegen_flags: <defaults>
</compile_context>

<pallas_src>
import jax
import jax.numpy as jnp
from jax.experimental import pallas as pl
from jax.experimental.pallas import tpu as pltpu


def _round_up(x, m):
    return ((x + m - 1) // m) * m


# ----------------------------------------------------------------------------
# Pallas kernel factory: per (batch, M-tile) program, in-body tap loop
# ----------------------------------------------------------------------------
def _make_kernel(KH, KW, dilation, Wf, TM, sub_align):
    kw_ext = (KW - 1) * dilation

    def kernel(x_ref, w_ref, b_ref, out_ref, acc_ref):
        # x_ref : (1, Lx, 2*IC)        whole flattened image, VMEM resident
        # w_ref : (KH*KW, 2*IC, OC2)   fused complex weight, one slab per tap
        # b_ref : (1, OC2) f32         precombined bias [b_re-b_im | b_re+b_im]
        # out   : (1, TM, OC2) f32
        # acc   : (TM, OC2) f32        VMEM scratch accumulator
        base = pl.multiple_of(pl.program_id(1) * TM, sub_align)
        first = True
        for kh in range(KH):
            # Aligned dynamic start: base and kh*dilation*Wf are multiples of
            # the sublane tile (Wf is rounded up to it).
            rows = x_ref[0, pl.ds(base + kh * dilation * Wf, TM + kw_ext), :]
            for kw in range(KW):
                lhs = rows[kw * dilation: kw * dilation + TM, :]     # static slice
                prod = jnp.dot(lhs, w_ref[kh * KW + kw],
                               preferred_element_type=jnp.float32)
                if first:
                    acc_ref[...] = prod
                    first = False
                else:
                    acc_ref[...] += prod
        out_ref[0] = (acc_ref[...] + b_ref[...]).astype(out_ref.dtype)

    return kernel


# ----------------------------------------------------------------------------
# Host-side glue
# ----------------------------------------------------------------------------
def complex_conv2d_pallas(x_re, x_im, w_re, w_im, b_re, b_im, *,
                          stride=1, padding=0, dilation=1, use_bf16=True):
    """x_*: (N,H,W,IC) f32; w_*: (KH,KW,IC,OC) HWIO; b_*: (OC,). Returns (re, im)."""
    N, H, W, IC = x_re.shape
    KH, KW, _, OC = w_re.shape
    d = dilation

    in_dtype = jnp.bfloat16 if use_bf16 else jnp.float32
    itemsize = jnp.dtype(in_dtype).itemsize
    sub_align = 8 * 4 // itemsize          # sublane tile rows (8 f32 / 16 bf16)
    lane = 128

    # ---- geometry (stride-1 "flattened conv", subsample afterwards) --------
    Hp0 = H + 2 * padding
    Wp0 = W + 2 * padding
    OHs = Hp0 - d * (KH - 1)               # stride-1 output rows
    OWs = Wp0 - d * (KW - 1)               # stride-1 output cols (valid)
    assert OHs >= 1 and OWs >= 1, "kernel larger than padded input"
    OH = (OHs - 1) // stride + 1
    OW = (OWs - 1) // stride + 1

    # ---- output-channel padding: lane-dense only when it costs < 2x --------
    ocp_dense = _round_up(OC, 64)
    ocp_small = _round_up(OC, 8)
    OCP = ocp_small if ocp_dense > 2 * ocp_small else ocp_dense
    OC2 = 2 * OCP

    Wf = _round_up(Wp0, sub_align)         # flattening width (keeps taps aligned)
    Mvalid = OHs * Wf                      # stride-1 output rows incl. junk cols
    row_ext = (KH - 1) * d * Wf + (KW - 1) * d

    # ---- generation-aware VMEM budget ---------------------------------------
    try:
        vmem_cap = int(pltpu.get_tpu_info().vmem_capacity_bytes)
    except Exception:
        vmem_cap = 64 * 1024 * 1024
    vmem_limit = (40 * 1024 * 1024 if vmem_cap <= 80 * 1024 * 1024
                  else 64 * 1024 * 1024)
    block_budget = int(vmem_limit * 0.7)

    x_row_bytes = _round_up(2 * IC, lane) * itemsize
    fixed_bytes = (2 * (_round_up(Mvalid, sub_align) + row_ext + Wf) * x_row_bytes
                   + 2 * KH * KW * _round_up(2 * IC, sub_align)
                   * _round_up(OC2, lane) * itemsize)
    if fixed_bytes > block_budget:
        # TODO(synk): halo-tiled manual DMA over H for very large images.
        raise NotImplementedError("image too large for whole-image VMEM residency")

    per_row_bytes = 3 * _round_up(OC2, lane) * 4 + x_row_bytes
    tm = max(sub_align,
             ((block_budget - fixed_bytes) // per_row_bytes)
             // sub_align * sub_align)
    tm = min(tm, _round_up(Mvalid, sub_align))
    if N == 1 and Mvalid >= 2 * sub_align:
        # Keep >= 2 grid programs so both v7x TensorCores get work.
        tm = min(tm, max(sub_align, _round_up(-(-Mvalid // 2), sub_align)))
    TM = tm
    Mp = _round_up(Mvalid, TM)
    grid_m = Mp // TM

    rows_needed = Mp + row_ext
    Htot = -(-rows_needed // Wf)
    Lx = Htot * Wf

    # ---- activations: concat re|im, pad spatially, flatten (single pass) ---
    x_cat = jnp.concatenate([x_re, x_im], axis=-1).astype(in_dtype)   # (N,H,W,2IC)
    x_sp = jnp.pad(x_cat, ((0, 0),
                           (padding, Htot - H - padding),
                           (padding, Wf - W - padding),
                           (0, 0)))
    x_flat = x_sp.reshape(N, Lx, 2 * IC)

    # ---- fused complex weight per tap: [[w_re, w_im], [-w_im, w_re]] -------
    wre = w_re.reshape(KH * KW, IC, OC)
    wim = w_im.reshape(KH * KW, IC, OC)

    def _pad_oc(w):
        return jnp.pad(w, ((0, 0), (0, 0), (0, OCP - OC)))

    w_top = jnp.concatenate([_pad_oc(wre), _pad_oc(wim)], axis=-1)    # (T, IC, OC2)
    w_bot = jnp.concatenate([_pad_oc(-wim), _pad_oc(wre)], axis=-1)   # (T, IC, OC2)
    w_full = jnp.concatenate([w_top, w_bot], axis=1).astype(in_dtype)  # (T, 2IC, OC2)

    b_real = jnp.pad(b_re - b_im, (0, OCP - OC))
    b_imag = jnp.pad(b_re + b_im, (0, OCP - OC))
    b_full = jnp.concatenate([b_real, b_imag])[None, :].astype(jnp.float32)

    kernel = _make_kernel(KH, KW, d, Wf, TM, sub_align)

    grid_spec = pltpu.PrefetchScalarGridSpec(
        num_scalar_prefetch=0,
        grid=(N, grid_m),
        in_specs=[
            pl.BlockSpec((1, Lx, 2 * IC), lambda n, m: (n, 0, 0)),
            pl.BlockSpec((KH * KW, 2 * IC, OC2), lambda n, m: (0, 0, 0)),
            pl.BlockSpec((1, OC2), lambda n, m: (0, 0)),
        ],
        out_specs=pl.BlockSpec((1, TM, OC2), lambda n, m: (n, m, 0)),
        scratch_shapes=[pltpu.VMEM((TM, OC2), jnp.float32)],
    )

    cost = pl.CostEstimate(
        flops=8 * N * OH * OW * KH * KW * IC * OC,
        transcendentals=0,
        bytes_accessed=(N * H * W * 2 * IC * itemsize        # activations
                        + KH * KW * 2 * IC * 2 * OC * itemsize  # weights
                        + 2 * OC * 4                          # bias
                        + N * OH * OW * 2 * OC * 4),          # outputs
    )

    out = pl.pallas_call(
        kernel,
        out_shape=jax.ShapeDtypeStruct((N, Mp, OC2), jnp.float32),
        grid_spec=grid_spec,
        compiler_params=pltpu.CompilerParams(
            dimension_semantics=("parallel", "parallel"),
            vmem_limit_bytes=vmem_limit),
        cost_estimate=cost,
    )(x_flat, w_full, b_full)

    # ---- un-flatten; drop junk columns, padded rows, padded channels -------
    out = out[:, :Mvalid, :].reshape(N, OHs, Wf, OC2)
    out = out[:, ::stride, ::stride, :][:, :OH, :OW, :]
    out_re = out[..., :OC]
    out_im = out[..., OCP:OCP + OC]
    return out_re, out_im


# ----------------------------------------------------------------------------
# Module-like wrapper mirroring BaseComplexConv (Conv2d factory)
# ----------------------------------------------------------------------------
class ComplexConv2d:
    """JAX/Pallas port of BaseComplexConv with a 2-D convolution factory."""

    def __init__(self, in_channel, out_channel, kernel_size,
                 stride=1, padding=0, dilation=1, groups=1, bias=True,
                 *, key, use_bf16=True):
        # TODO(synk): groups != 1 not supported by this kernel.
        assert groups == 1
        self.stride, self.padding, self.dilation = stride, padding, dilation
        self.use_bf16 = use_bf16
        KH = KW = kernel_size
        fan_in = in_channel * KH * KW
        bound = 1.0 / float(jnp.sqrt(fan_in))
        k1, k2, k3, k4 = jax.random.split(key, 4)
        # PyTorch Conv2d weight layout: (OC, IC, KH, KW); bias: (OC,)
        self.w_re = jax.random.uniform(k1, (out_channel, in_channel, KH, KW),
                                       jnp.float32, -bound, bound)
        self.w_im = jax.random.uniform(k2, (out_channel, in_channel, KH, KW),
                                       jnp.float32, -bound, bound)
        if bias:
            self.b_re = jax.random.uniform(k3, (out_channel,), jnp.float32, -bound, bound)
            self.b_im = jax.random.uniform(k4, (out_channel,), jnp.float32, -bound, bound)
        else:
            self.b_re = jnp.zeros((out_channel,), jnp.float32)
            self.b_im = jnp.zeros((out_channel,), jnp.float32)

    def __call__(self, x):
        # x: (N, IC, H, W) complex64
        x_re = jnp.real(x).astype(jnp.float32)
        x_im = jnp.imag(x).astype(jnp.float32)
        # NCHW -> NHWC
        x_re = jnp.transpose(x_re, (0, 2, 3, 1))
        x_im = jnp.transpose(x_im, (0, 2, 3, 1))
        # OIHW -> HWIO
        w_re = jnp.transpose(self.w_re, (2, 3, 1, 0))
        w_im = jnp.transpose(self.w_im, (2, 3, 1, 0))
        o_re, o_im = complex_conv2d_pallas(
            x_re, x_im, w_re, w_im, self.b_re, self.b_im,
            stride=self.stride, padding=self.padding, dilation=self.dilation,
            use_bf16=self.use_bf16)
        # NHWC -> NCHW, then view_as_complex
        o_re = jnp.transpose(o_re, (0, 3, 1, 2))
        o_im = jnp.transpose(o_im, (0, 3, 1, 2))
        return jax.lax.complex(o_re, o_im)


# ----------------------------------------------------------------------------
# Pure-JAX reference (mirrors PyTorch forward exactly)
# ----------------------------------------------------------------------------
def _reference(x, module):
    def conv(z, w, b):
        y = jax.lax.conv_general_dilated(
            z, w, window_strides=(module.stride, module.stride),
            padding=[(module.padding, module.padding)] * 2,
            rhs_dilation=(module.dilation, module.dilation),
            dimension_numbers=('NCHW', 'OIHW', 'NCHW'))
        return y + b[None, :, None, None]

    x_re = jnp.real(x).astype(jnp.float32)
    x_im = jnp.imag(x).astype(jnp.float32)
    real = conv(x_re, module.w_re, module.b_re) - conv(x_im, module.w_im, module.b_im)
    imag = conv(x_im, module.w_re, module.b_re) + conv(x_re, module.w_im, module.b_im)
    return jax.lax.complex(real, imag)


if __name__ == "__main__":
    key = jax.random.PRNGKey(0)
    k_x_re, k_x_im, k_params = jax.random.split(key, 3)

    N, IC, OC, H, W, KSIZE = 2, 4, 8, 16, 16, 3
    x = jax.lax.complex(
        jax.random.normal(k_x_re, (N, IC, H, W), jnp.float32),
        jax.random.normal(k_x_im, (N, IC, H, W), jnp.float32),
    )  # complex64, NCHW — matches PyTorch input convention

    # bf16 activation/weight path by default (f32 MXU accumulation).
    module = ComplexConv2d(IC, OC, KSIZE, stride=1, padding=0, key=k_params)

    out = module(x)
    out = jax.block_until_ready(out)
    assert out.shape == (N, OC, H - KSIZE + 1, W - KSIZE + 1)
    assert out.dtype == jnp.complex64

    ref = jax.block_until_ready(_reference(x, module))
    # bf16 inputs + f32 accumulation vs f32 lax.conv reference
    assert jnp.allclose(jnp.real(out), jnp.real(ref), atol=5e-2, rtol=5e-2)
    assert jnp.allclose(jnp.imag(out), jnp.imag(ref), atol=5e-2, rtol=5e-2)

    print("KERNEL_OK")
</pallas_src>

<mosaic_0001>
module attributes {stable_mosaic.version = 11 : i64} {
  func.func @kernel(%arg0: i32, %arg1: i32, %arg2: memref<1x272x8xbf16, #tpu.memory_space<vmem>>, %arg3: memref<9x8x16xbf16, #tpu.memory_space<vmem>>, %arg4: memref<1x16xf32, #tpu.memory_space<vmem>>, %arg5: memref<1x224x16xf32, #tpu.memory_space<vmem>>, %arg6: memref<224x16xf32, #tpu.memory_space<vmem>>) attributes {dimension_semantics = [#tpu.dimension_semantics<parallel>, #tpu.dimension_semantics<parallel>], iteration_bounds = array<i64: 2, 1>, scalar_prefetch = 0 : i64, scratch_operands = 1 : i64, tpu.core_type = #tpu.core_type<tc>, window_params = [{transform_indices = @transform_0, window_bounds = array<i64: 1, 272, 8>}, {pipeline_mode = #tpu.pipeline_mode<synchronous>, transform_indices = @transform_1, window_bounds = array<i64: 9, 8, 16>}, {pipeline_mode = #tpu.pipeline_mode<synchronous>, transform_indices = @transform_2, window_bounds = array<i64: 1, 16>}, {transform_indices = @transform_3, window_bounds = array<i64: 1, 224, 16>}]} {
    %c224_i32 = arith.constant 224 : i32
    %0 = arith.muli %arg1, %c224_i32 : i32
    %1 = tpu.assume_multiple %0, 16 : i32
    %c0_i32 = arith.constant 0 : i32
    %2 = arith.addi %1, %c0_i32 : i32
    %c0 = arith.constant 0 : index
    %3 = arith.index_cast %2 : i32 to index
    %c0_0 = arith.constant 0 : index
    %4 = vector.load %arg2[%c0, %3, %c0_0] : memref<1x272x8xbf16, #tpu.memory_space<vmem>>, vector<1x226x8xbf16>
    %5 = vector.shape_cast %4 : vector<1x226x8xbf16> to vector<226x8xbf16>
    %6 = vector.extract_strided_slice %5 {offsets = [0, 0], sizes = [224, 8], strides = [1, 1]} : vector<226x8xbf16> to vector<224x8xbf16>
    %c0_1 = arith.constant 0 : index
    %c0_2 = arith.constant 0 : index
    %c0_3 = arith.constant 0 : index
    %7 = vector.load %arg3[%c0_1, %c0_2, %c0_3] : memref<9x8x16xbf16, #tpu.memory_space<vmem>>, vector<1x8x16xbf16>
    %8 = vector.shape_cast %7 : vector<1x8x16xbf16> to vector<8x16xbf16>
    %cst = arith.constant dense<0.000000e+00> : vector<224x16xf32>
    %9 = tpu.matmul %6, %8, %cst {dimension_numbers = #tpu.dot_dimension_numbers<[1], [0], [0], [1], [0, 0, 1, 1], [], []>} : vector<224x8xbf16>, vector<8x16xbf16>, vector<224x16xf32> -> vector<224x16xf32>
    %c0_4 = arith.constant 0 : index
    %c0_5 = arith.constant 0 : index
    %10 = vector.load %arg6[%c0_4, %c0_5] : memref<224x16xf32, #tpu.memory_space<vmem>>, vector<224x16xf32>
    tpu.vector_store %arg6[%c0_4, %c0_5], %9 {strides = array<i32>} : memref<224x16xf32, #tpu.memory_space<vmem>>, vector<224x16xf32>,
    %11 = vector.extract_strided_slice %5 {offsets = [1, 0], sizes = [224, 8], strides = [1, 1]} : vector<226x8xbf16> to vector<224x8xbf16>
    %c1 = arith.constant 1 : index
    %c0_6 = arith.constant 0 : index
    %c0_7 = arith.constant 0 : index
    %12 = vector.load %arg3[%c1, %c0_6, %c0_7] : memref<9x8x16xbf16, #tpu.memory_space<vmem>>, vector<1x8x16xbf16>
    %13 = vector.shape_cast %12 : vector<1x8x16xbf16> to vector<8x16xbf16>
    %cst_8 = arith.constant dense<0.000000e+00> : vector<224x16xf32>
    %14 = tpu.matmul %11, %13, %cst_8 {dimension_numbers = #tpu.dot_dimension_numbers<[1], [0], [0], [1], [0, 0, 1, 1], [], []>} : vector<224x8xbf16>, vector<8x16xbf16>, vector<224x16xf32> -> vector<224x16xf32>
    %c0_9 = arith.constant 0 : index
    %c0_10 = arith.constant 0 : index
    %15 = vector.load %arg6[%c0_9, %c0_10] : memref<224x16xf32, #tpu.memory_space<vmem>>, vector<224x16xf32>
    %16 = arith.addf %15, %14 : vector<224x16xf32>
    %c0_11 = arith.constant 0 : index
    %c0_12 = arith.constant 0 : index
    %17 = vector.load %arg6[%c0_11, %c0_12] : memref<224x16xf32, #tpu.memory_space<vmem>>, vector<224x16xf32>
    tpu.vector_store %arg6[%c0_11, %c0_12], %16 {strides = array<i32>} : memref<224x16xf32, #tpu.memory_space<vmem>>, vector<224x16xf32>,
    %18 = vector.extract_strided_slice %5 {offsets = [2, 0], sizes = [224, 8], strides = [1, 1]} : vector<226x8xbf16> to vector<224x8xbf16>
    %c2 = arith.constant 2 : index
    %c0_13 = arith.constant 0 : index
    %c0_14 = arith.constant 0 : index
    %19 = vector.load %arg3[%c2, %c0_13, %c0_14] : memref<9x8x16xbf16, #tpu.memory_space<vmem>>, vector<1x8x16xbf16>
    %20 = vector.shape_cast %19 : vector<1x8x16xbf16> to vector<8x16xbf16>
    %cst_15 = arith.constant dense<0.000000e+00> : vector<224x16xf32>
    %21 = tpu.matmul %18, %20, %cst_15 {dimension_numbers = #tpu.dot_dimension_numbers<[1], [0], [0], [1], [0, 0, 1, 1], [], []>} : vector<224x8xbf16>, vector<8x16xbf16>, vector<224x16xf32> -> vector<224x16xf32>
    %c0_16 = arith.constant 0 : index
    %c0_17 = arith.constant 0 : index
    %22 = vector.load %arg6[%c0_16, %c0_17] : memref<224x16xf32, #tpu.memory_space<vmem>>, vector<224x16xf32>
    %23 = arith.addf %22, %21 : vector<224x16xf32>
    %c0_18 = arith.constant 0 : index
    %c0_19 = arith.constant 0 : index
    %24 = vector.load %arg6[%c0_18, %c0_19] : memref<224x16xf32, #tpu.memory_space<vmem>>, vector<224x16xf32>
    tpu.vector_store %arg6[%c0_18, %c0_19], %23 {strides = array<i32>} : memref<224x16xf32, #tpu.memory_space<vmem>>, vector<224x16xf32>,
    %c16_i32 = arith.constant 16 : i32
    %25 = arith.addi %1, %c16_i32 : i32
    %c0_20 = arith.constant 0 : index
    %26 = arith.index_cast %25 : i32 to index
    %c0_21 = arith.constant 0 : index
    %27 = vector.load %arg2[%c0_20, %26, %c0_21] : memref<1x272x8xbf16, #tpu.memory_space<vmem>>, vector<1x226x8xbf16>
    %28 = vector.shape_cast %27 : vector<1x226x8xbf16> to vector<226x8xbf16>
    %29 = vector.extract_strided_slice %28 {offsets = [0, 0], sizes = [224, 8], strides = [1, 1]} : vector<226x8xbf16> to vector<224x8xbf16>
    %c3 = arith.constant 3 : index
    %c0_22 = arith.constant 0 : index
    %c0_23 = arith.constant 0 : index
    %30 = vector.load %arg3[%c3, %c0_22, %c0_23] : memref<9x8x16xbf16, #tpu.memory_space<vmem>>, vector<1x8x16xbf16>
    %31 = vector.shape_cast %30 : vector<1x8x16xbf16> to vector<8x16xbf16>
    %cst_24 = arith.constant dense<0.000000e+00> : vector<224x16xf32>
    %32 = tpu.matmul %29, %31, %cst_24 {dimension_numbers = #tpu.dot_dimension_numbers<[1], [0], [0], [1], [0, 0, 1, 1], [], []>} : vector<224x8xbf16>, vector<8x16xbf16>, vector<224x16xf32> -> vector<224x16xf32>
    %c0_25 = arith.constant 0 : index
    %c0_26 = arith.constant 0 : index
    %33 = vector.load %arg6[%c0_25, %c0_26] : memref<224x16xf32, #tpu.memory_space<vmem>>, vector<224x16xf32>
    %34 = arith.addf %33, %32 : vector<224x16xf32>
    %c0_27 = arith.constant 0 : index
    %c0_28 = arith.constant 0 : index
    %35 = vector.load %arg6[%c0_27, %c0_28] : memref<224x16xf32, #tpu.memory_space<vmem>>, vector<224x16xf32>
    tpu.vector_store %arg6[%c0_27, %c0_28], %34 {strides = array<i32>} : memref<224x16xf32, #tpu.memory_space<vmem>>, vector<224x16xf32>,
    %36 = vector.extract_strided_slice %28 {offsets = [1, 0], sizes = [224, 8], strides = [1, 1]} : vector<226x8xbf16> to vector<224x8xbf16>
    %c4 = arith.constant 4 : index
    %c0_29 = arith.constant 0 : index
    %c0_30 = arith.constant 0 : index
    %37 = vector.load %arg3[%c4, %c0_29, %c0_30] : memref<9x8x16xbf16, #tpu.memory_space<vmem>>, vector<1x8x16xbf16>
    %38 = vector.shape_cast %37 : vector<1x8x16xbf16> to vector<8x16xbf16>
    %cst_31 = arith.constant dense<0.000000e+00> : vector<224x16xf32>
    %39 = tpu.matmul %36, %38, %cst_31 {dimension_numbers = #tpu.dot_dimension_numbers<[1], [0], [0], [1], [0, 0, 1, 1], [], []>} : vector<224x8xbf16>, vector<8x16xbf16>, vector<224x16xf32> -> vector<224x16xf32>
    %c0_32 = arith.constant 0 : index
    %c0_33 = arith.constant 0 : index
    %40 = vector.load %arg6[%c0_32, %c0_33] : memref<224x16xf32, #tpu.memory_space<vmem>>, vector<224x16xf32>
    %41 = arith.addf %40, %39 : vector<224x16xf32>
    %c0_34 = arith.constant 0 : index
    %c0_35 = arith.constant 0 : index
    %42 = vector.load %arg6[%c0_34, %c0_35] : memref<224x16xf32, #tpu.memory_space<vmem>>, vector<224x16xf32>
    tpu.vector_store %arg6[%c0_34, %c0_35], %41 {strides = array<i32>} : memref<224x16xf32, #tpu.memory_space<vmem>>, vector<224x16xf32>,
    %43 = vector.extract_strided_slice %28 {offsets = [2, 0], sizes = [224, 8], strides = [1, 1]} : vector<226x8xbf16> to vector<224x8xbf16>
    %c5 = arith.constant 5 : index
    %c0_36 = arith.constant 0 : index
    %c0_37 = arith.constant 0 : index
    %44 = vector.load %arg3[%c5, %c0_36, %c0_37] : memref<9x8x16xbf16, #tpu.memory_space<vmem>>, vector<1x8x16xbf16>
    %45 = vector.shape_cast %44 : vector<1x8x16xbf16> to vector<8x16xbf16>
    %cst_38 = arith.constant dense<0.000000e+00> : vector<224x16xf32>
    %46 = tpu.matmul %43, %45, %cst_38 {dimension_numbers = #tpu.dot_dimension_numbers<[1], [0], [0], [1], [0, 0, 1, 1], [], []>} : vector<224x8xbf16>, vector<8x16xbf16>, vector<224x16xf32> -> vector<224x16xf32>
    %c0_39 = arith.constant 0 : index
    %c0_40 = arith.constant 0 : index
    %47 = vector.load %arg6[%c0_39, %c0_40] : memref<224x16xf32, #tpu.memory_space<vmem>>, vector<224x16xf32>
    %48 = arith.addf %47, %46 : vector<224x16xf32>
    %c0_41 = arith.constant 0 : index
    %c0_42 = arith.constant 0 : index
    %49 = vector.load %arg6[%c0_41, %c0_42] : memref<224x16xf32, #tpu.memory_space<vmem>>, vector<224x16xf32>
    tpu.vector_store %arg6[%c0_41, %c0_42], %48 {strides = array<i32>} : memref<224x16xf32, #tpu.memory_space<vmem>>, vector<224x16xf32>,
    %c32_i32 = arith.constant 32 : i32
    %50 = arith.addi %1, %c32_i32 : i32
    %c0_43 = arith.constant 0 : index
    %51 = arith.index_cast %50 : i32 to index
    %c0_44 = arith.constant 0 : index
    %52 = vector.load %arg2[%c0_43, %51, %c0_44] : memref<1x272x8xbf16, #tpu.memory_space<vmem>>, vector<1x226x8xbf16>
    %53 = vector.shape_cast %52 : vector<1x226x8xbf16> to vector<226x8xbf16>
    %54 = vector.extract_strided_slice %53 {offsets = [0, 0], sizes = [224, 8], strides = [1, 1]} : vector<226x8xbf16> to vector<224x8xbf16>
    %c6 = arith.constant 6 : index
    %c0_45 = arith.constant 0 : index
    %c0_46 = arith.constant 0 : index
    %55 = vector.load %arg3[%c6, %c0_45, %c0_46] : memref<9x8x16xbf16, #tpu.memory_space<vmem>>, vector<1x8x16xbf16>
    %56 = vector.shape_cast %55 : vector<1x8x16xbf16> to vector<8x16xbf16>
    %cst_47 = arith.constant dense<0.000000e+00> : vector<224x16xf32>
    %57 = tpu.matmul %54, %56, %cst_47 {dimension_numbers = #tpu.dot_dimension_numbers<[1], [0], [0], [1], [0, 0, 1, 1], [], []>} : vector<224x8xbf16>, vector<8x16xbf16>, vector<224x16xf32> -> vector<224x16xf32>
    %c0_48 = arith.constant 0 : index
    %c0_49 = arith.constant 0 : index
    %58 = vector.load %arg6[%c0_48, %c0_49] : memref<224x16xf32, #tpu.memory_space<vmem>>, vector<224x16xf32>
    %59 = arith.addf %58, %57 : vector<224x16xf32>
    %c0_50 = arith.constant 0 : index
    %c0_51 = arith.constant 0 : index
    %60 = vector.load %arg6[%c0_50, %c0_51] : memref<224x16xf32, #tpu.memory_space<vmem>>, vector<224x16xf32>
    tpu.vector_store %arg6[%c0_50, %c0_51], %59 {strides = array<i32>} : memref<224x16xf32, #tpu.memory_space<vmem>>, vector<224x16xf32>,
    %61 = vector.extract_strided_slice %53 {offsets = [1, 0], sizes = [224, 8], strides = [1, 1]} : vector<226x8xbf16> to vector<224x8xbf16>
    %c7 = arith.constant 7 : index
    %c0_52 = arith.constant 0 : index
    %c0_53 = arith.constant 0 : index
    %62 = vector.load %arg3[%c7, %c0_52, %c0_53] : memref<9x8x16xbf16, #tpu.memory_space<vmem>>, vector<1x8x16xbf16>
    %63 = vector.shape_cast %62 : vector<1x8x16xbf16> to vector<8x16xbf16>
    %cst_54 = arith.constant dense<0.000000e+00> : vector<224x16xf32>
    %64 = tpu.matmul %61, %63, %cst_54 {dimension_numbers = #tpu.dot_dimension_numbers<[1], [0], [0], [1], [0, 0, 1, 1], [], []>} : vector<224x8xbf16>, vector<8x16xbf16>, vector<224x16xf32> -> vector<224x16xf32>
    %c0_55 = arith.constant 0 : index
    %c0_56 = arith.constant 0 : index
    %65 = vector.load %arg6[%c0_55, %c0_56] : memref<224x16xf32, #tpu.memory_space<vmem>>, vector<224x16xf32>
    %66 = arith.addf %65, %64 : vector<224x16xf32>
    %c0_57 = arith.constant 0 : index
    %c0_58 = arith.constant 0 : index
    %67 = vector.load %arg6[%c0_57, %c0_58] : memref<224x16xf32, #tpu.memory_space<vmem>>, vector<224x16xf32>
    tpu.vector_store %arg6[%c0_57, %c0_58], %66 {strides = array<i32>} : memref<224x16xf32, #tpu.memory_space<vmem>>, vector<224x16xf32>,
    %68 = vector.extract_strided_slice %53 {offsets = [2, 0], sizes = [224, 8], strides = [1, 1]} : vector<226x8xbf16> to vector<224x8xbf16>
    %c8 = arith.constant 8 : index
    %c0_59 = arith.constant 0 : index
    %c0_60 = arith.constant 0 : index
    %69 = vector.load %arg3[%c8, %c0_59, %c0_60] : memref<9x8x16xbf16, #tpu.memory_space<vmem>>, vector<1x8x16xbf16>
    %70 = vector.shape_cast %69 : vector<1x8x16xbf16> to vector<8x16xbf16>
    %cst_61 = arith.constant dense<0.000000e+00> : vector<224x16xf32>
    %71 = tpu.matmul %68, %70, %cst_61 {dimension_numbers = #tpu.dot_dimension_numbers<[1], [0], [0], [1], [0, 0, 1, 1], [], []>} : vector<224x8xbf16>, vector<8x16xbf16>, vector<224x16xf32> -> vector<224x16xf32>
    %c0_62 = arith.constant 0 : index
    %c0_63 = arith.constant 0 : index
    %72 = vector.load %arg6[%c0_62, %c0_63] : memref<224x16xf32, #tpu.memory_space<vmem>>, vector<224x16xf32>
    %73 = arith.addf %72, %71 : vector<224x16xf32>
    %c0_64 = arith.constant 0 : index
    %c0_65 = arith.constant 0 : index
    %74 = vector.load %arg6[%c0_64, %c0_65] : memref<224x16xf32, #tpu.memory_space<vmem>>, vector<224x16xf32>
    tpu.vector_store %arg6[%c0_64, %c0_65], %73 {strides = array<i32>} : memref<224x16xf32, #tpu.memory_space<vmem>>, vector<224x16xf32>,
    %c0_66 = arith.constant 0 : index
    %c0_67 = arith.constant 0 : index
    %75 = vector.load %arg6[%c0_66, %c0_67] : memref<224x16xf32, #tpu.memory_space<vmem>>, vector<224x16xf32>
    %c0_68 = arith.constant 0 : index
    %c0_69 = arith.constant 0 : index
    %76 = vector.load %arg4[%c0_68, %c0_69] : memref<1x16xf32, #tpu.memory_space<vmem>>, vector<1x16xf32>
    %77 = vector.broadcast %76 : vector<1x16xf32> to vector<224x16xf32>
    %78 = arith.addf %75, %77 : vector<224x16xf32>
    %c0_70 = arith.constant 0 : index
    %c0_71 = arith.constant 0 : index
    %c0_72 = arith.constant 0 : index
    %79 = vector.load %arg5[%c0_70, %c0_71, %c0_72] : memref<1x224x16xf32, #tpu.memory_space<vmem>>, vector<1x224x16xf32>
    %80 = vector.shape_cast %79 : vector<1x224x16xf32> to vector<224x16xf32>
    %81 = vector.shape_cast %78 : vector<224x16xf32> to vector<1x224x16xf32>
    tpu.vector_store %arg5[%c0_70, %c0_71, %c0_72], %81 {strides = array<i32>} : memref<1x224x16xf32, #tpu.memory_space<vmem>>, vector<1x224x16xf32>,
    return
  }
  func.func @transform_0(%arg0: i32, %arg1: i32) -> (i32, i32, i32) {
    %c0_i32 = arith.constant 0 : i32
    %c0_i32_0 = arith.constant 0 : i32
    %c0_i32_1 = arith.constant 0 : i32
    return %arg0, %c0_i32, %c0_i32_0 : i32, i32, i32
  }
  func.func @transform_1(%arg0: i32, %arg1: i32) -> (i32, i32, i32) {
    %c0_i32 = arith.constant 0 : i32
    %c0_i32_0 = arith.constant 0 : i32
    %c0_i32_1 = arith.constant 0 : i32
    %c0_i32_2 = arith.constant 0 : i32
    return %c0_i32, %c0_i32_0, %c0_i32_1 : i32, i32, i32
  }
  func.func @transform_2(%arg0: i32, %arg1: i32) -> (i32, i32) {
    %c0_i32 = arith.constant 0 : i32
    %c0_i32_0 = arith.constant 0 : i32
    %c0_i32_1 = arith.constant 0 : i32
    return %c0_i32, %c0_i32_0 : i32, i32
  }
  func.func @transform_3(%arg0: i32, %arg1: i32) -> (i32, i32, i32) {
    %c0_i32 = arith.constant 0 : i32
    %c0_i32_0 = arith.constant 0 : i32
    return %arg0, %arg1, %c0_i32 : i32, i32, i32
  }
}

</mosaic_0001>

<bundles_post_ra>
// kernel: tpu_custom_call.1
= control target key start
LH: loop header
LB: loop body
LE: loop exit
PB: predicated region body
PF: predicated region fallthrough
CT: control target
= control target key end

     0   :  { %s4298_s12 = smov 0   ;;  %s4300_s13 = smov 0   ;;  %s5255_s0 = inlined_call_operand.vmem [shape: bf16[2,272,8], index: 0, kind: input, shape index: {}]   ;;  %s5256_s1 = inlined_call_operand.vmem [shape: bf16[9,8,16], index: 1, kind: input, shape index: {}]   ;;  %s5257_s2 = inlined_call_operand.vmem [shape: f32[1,16], index: 2, kind: input, shape index: {}]   ;;  %s5258_s3 = inlined_call_operand.vmem [shape: f32[2,224,16], index: 3, kind: output, shape index: {}]  }
   0x1   :  { %s4302_s14 = smov 0  }
   0x2 LB: > { %s25_s15 = sadd.s32 1, %s4272_s13  ;;  %p3523_p0 = scmp.ge.s32.totalorder %s4276_s14, 1  ;;  %s4276_s14 = sphi %s4302_s14, %s13_s14   ;;  %s4272_s13 = sphi %s4300_s13, %s5260_s13   ;;  %s4268_s12 = sphi %s4298_s12, %s5259_s12  }
   0x3   : > { %p27_p1 = scmp.ge.s32.totalorder %s25_s15, 2  ;;  %p151_p2 = scmp.lt.s32.totalorder %s4276_s14, 3 }
   0x5   : > { %s5262_s15 = smov (%p27_p1, %s25_s15), 0  ;;  %p152_p3 = pnand %p3523_p0, %p151_p2 }
   0x6   : > { %v229_v0 = vld [vmem:[%s5256_s1] sm:$0xf] (!%p152_p3)  ;;  %vm343_vm0 = vcmask (!%p152_p3), 1043456   ;;  %p179_p4 = scmp.lt.s32.totalorder (!%p152_p3), %s4268_s12, 1  ;;  %v3554_v2 = vld [vmem:[%s5256_s1 + $0x4] sm:$0xf] (!%p152_p3) }
   0x7   : > { %155 = sbr.rel (%p152_p3) target bundleno = 499 (0x1f3), region = 32  ;;  %4174 = vmatprep.subr.msk.bf16.mxu1 (!%p152_p3), %vm343_vm0, %v229_v0  ;;  %4173 = vmatprep.subr.msk.bf16.mxu0 (!%p152_p3), %vm343_vm0, %v229_v0  ;;  %v345_v1 = vsel (!%p152_p3), %vm343_vm0, %v229_v0, 0  ;;  %v3570_v3 = vld [vmem:[%s5256_s1 + $0x8] sm:$0xf] (!%p152_p3)  ;;  %vm300_vm1 = vcmask (!%p152_p3), 64512   ;;  %v672_v10 = vsel (!%p152_p3), %vm343_vm0, %v3554_v2, 0 }
   0x8   : > { %4172 = vmatpush3.bf16.msra.mxu1 (!%p152_p3), %v345_v1  ;;  %3902 = vmatpush3.bf16.msra.mxu0 (!%p152_p3), %v345_v1  ;;  %v978_v7 = vsel (!%p152_p3), %vm343_vm0, %v3570_v3, 0  ;;  %v3614_v8 = vld [vmem:[%s5256_s1 + $0xc] sm:$0xf] (!%p152_p3)  ;;  %v4359_v11 = vld [vmem:[%s5256_s1 + $0x10] sm:$0xf] (!%p152_p3)  ;;  %vm905_vm3 = vcmask (!%p152_p3), 1046528  }
   0x9   : > { %4175 = vmatprep.subr.msk.bf16.mxu1 (!%p152_p3), %vm343_vm0, %v3554_v2  ;;  %4176 = vmatprep.subr.msk.bf16.mxu0 (!%p152_p3), %vm343_vm0, %v3570_v3  ;;  %vm526_vm2 = vsmask.f32 (!%p152_p3), 7424  ;;  %v1358_v43 = vsel (!%p152_p3), %vm343_vm0, %v3614_v8, 0  ;;  %v4437_v47 = vld [vmem:[%s5256_s1 + $0x14] sm:$0xf] (!%p152_p3)  ;;  %v1739_v57 = vsel (!%p152_p3), %vm343_vm0, %v4359_v11, 0 }
   0xa   : > { %v4460_v63 = vld [vmem:[%s5256_s1 + $0x18] sm:$0xf] (!%p152_p3)  ;;  %vm492_vm4 = vcmask (!%p152_p3), 130048  }
   0xe   : > { %s5264_s12 = smov (!%p179_p4, %s4268_s12), 1 }
   0xf   : > { %s4183_s22 = smul.u32 136, %s5264_s12 }
  0x10   : > { %s4184_s11 = smul.u32 224, %s5264_s12 }
  0x11   : > { %s4336_s25 = scalar_lea.vmem %s5255_s0, %s4183_s22 }
  0x12   : > { %v4209_v4 = vld [vmem:[%s4336_s25] sm:$0xff]   ;;  %v4344_v6 = vld [vmem:[%s4336_s25 + $0x8] sm:$0xff]   ;;  %v4364_v12 = vld [vmem:[%s4336_s25 + $0x10] sm:$0xff]   ;;  %s5117_s19 = scalar_lea.vmem %s5258_s3, %s4184_s11 }
  0x13   : > { %v4340_v5 = vld [vmem:[%s4336_s25 + $0x40] sm:$0xff]   ;;  %3903 = vmatprep.mubr.msk.bf16.mxu0 %vm300_vm1, %v4209_v4  ;;  %v4353_v9 = vld [vmem:[%s4336_s25 + $0x48] sm:$0xff]   ;;  %v4369_v13 = vld [vmem:[%s4336_s25 + $0x50] sm:$0xff]   ;;  %v529_v15 = vshll.u32 %v4209_v4, 16  ;;  %v527_v19 = vshrl.u32 %v4209_v4, 16  ;;  %v533_v21 = vshll.u32 %v4344_v6, 16 }
  0x14   : > { %3919 = vmatprep.mubr.msk.bf16.mxu1 %vm300_vm1, %v4340_v5  ;;  %3904 = vmatmul.mubr.msk.bf16.vlgmr.msra.gmra.mrb[0].mxu0 %vm300_vm1, %v4344_v6  ;;  %v4376_v14 = vld [vmem:[%s4336_s25 + $0x18] sm:$0xff]   ;;  %v4385_v17 = vld [vmem:[%s4336_s25 + $0x20] sm:$0xff]   ;;  %v4400_v24 = vld [vmem:[%s4336_s25 + $0x28] sm:$0xff]   ;;  %v540_v27 = vshll.u32 %v4364_v12, 16  ;;  %v537_v28 = vshrl.u32 %v4344_v6, 16  ;;  %v544_v30 = vshrl.u32 %v4364_v12, 16 }
  0x15   : > { %3920 = vmatmul.mubr.msk.bf16.vlgmr.msra.gmra.mrb[0].mxu1 %vm300_vm1, %v4353_v9  ;;  %3962 = vmatpush3.bf16.msra.mxu0 %v978_v7  ;;  %v4380_v16 = vld [vmem:[%s4336_s25 + $0x58] sm:$0xff]   ;;  %v4388_v18 = vld [vmem:[%s4336_s25 + $0x60] sm:$0xff]   ;;  %v531_v20 = vrot.slane %v529_v15, 1  ;;  %v535_v23 = vrot.slane %v533_v21, 1  ;;  %v4403_v25 = vld [vmem:[%s4336_s25 + $0x68] sm:$0xff]   ;;  %v547_v31 = vshll.u32 %v4376_v14, 16 }
  0x16   : > { %3932 = vmatpush3.bf16.msra.mxu1 %v672_v10  ;;  %3907 = vmatprep.mubr.msk.bf16.mxu0 %vm300_vm1, %v4364_v12  ;;  %v4406_v26 = vld [vmem:[%s4336_s25 + $0x30] sm:$0xff]   ;;  %v542_v32 = vrot.slane %v540_v27, 1  ;;  %v906_v34 = vrot.slane %v4209_v4, 1  ;;  %v907_v35 = vrot.slane %v4344_v6, 1  ;;  %v4422_v38 = vld [vmem:[%s4336_s25 + $0x38] sm:$0xff]   ;;  %v554_v39 = vshll.u32 %v4385_v17, 16 }
  0x17   : > { %3923 = vmatprep.mubr.msk.bf16.mxu1 %vm300_vm1, %v4369_v13  ;;  %4177 = vmatprep.subr.msk.bf16.mxu1 %vm343_vm0, %v3614_v8  ;;  %v532_v22 = vor.u32 %v531_v20, %v527_v19  ;;  %v539_v33 = vor.u32 %v537_v28, %v535_v23  ;;  %v549_v37 = vrot.slane %v547_v31, 1  ;;  %v551_v42 = vshrl.u32 %v4376_v14, 16 }
  0x18   : > { %4178 = vmatprep.subr.msk.bf16.mxu0 %vm343_vm0, %v4359_v11  ;;  %v546_v36 = vor.u32 %v544_v30, %v542_v32  ;;  %v908_v41 = vsel %vm905_vm3, %v906_v34, %v907_v35  ;;  %v558_v45 = vshrl.u32 %v4385_v17, 16  ;;  %v561_v46 = vshll.u32 %v4400_v24, 16 }
  0x19   : > { %v536_v29 = vsel %vm526_vm2, %v532_v22, %v535_v23  ;;  %v543_v40 = vsel %vm526_vm2, %v539_v33, %v542_v32  ;;  %v556_v48 = vrot.slane %v554_v39, 1  ;;  %v909_v49 = vrot.slane %v4364_v12, 1 }
  0x1a   : > { %v550_v44 = vsel %vm526_vm2, %v546_v36, %v549_v37  ;;  %v553_v50 = vor.u32 %v551_v42, %v549_v37  ;;  %v563_v52 = vrot.slane %v561_v46, 1  ;;  %v911_v53 = vrot.slane %v4376_v14, 1 }
  0x1b   : > { %v560_v51 = vor.u32 %v558_v45, %v556_v48  ;;  %v910_v54 = vsel %vm905_vm3, %v907_v35, %v909_v49  ;;  %v568_v55 = vshll.u32 %v4406_v26, 16  ;;  %v565_v58 = vshrl.u32 %v4400_v24, 16 }
  0x1c   : > { %3908 = vmatmul.mubr.msk.bf16.gmra.mrb[4].mxu0 %vm300_vm1, %v4376_v14  ;;  %v557_v56 = vsel %vm526_vm2, %v553_v50, %v556_v48  ;;  %v912_v60 = vsel %vm905_vm3, %v909_v49, %v911_v53  ;;  %v572_v61 = vshrl.u32 %v4406_v26, 16  ;;  %v575_v62 = vshll.u32 %v4422_v38, 16 }
  0x1d   : > { %3924 = vmatmul.mubr.msk.bf16.gmra.mrb[4].mxu1 %vm300_vm1, %v4380_v16  ;;  %3911 = vmatprep.mubr.msk.bf16.mxu0 %vm300_vm1, %v4385_v17  ;;  %v564_v59 = vsel %vm526_vm2, %v560_v51, %v563_v52  ;;  %v570_v0 = vrot.slane %v568_v55, 1  ;;  %v913_v1 = vrot.slane %v4385_v17, 1  ;;  %v567_v2 = vor.u32 %v565_v58, %v563_v52  ;;  %v4223_v51 = vld [vmem:[%s4336_s25 + $0x70] ss:$0 sps:$4 sm:$0x11]  }
  0x1e   : > { %3927 = vmatprep.mubr.msk.bf16.mxu1 %vm300_vm1, %v4388_v18  ;;  %v915_v3 = vrot.slane %v4400_v24, 1  ;;  %v577_v6 = vrot.slane %v575_v62, 1  ;;  %v582_v8 = vshll.u32 %v4340_v5, 16  ;;  %v579_v12 = vshrl.u32 %v4422_v38, 16 }
  0x1f   : > { %v574_v4 = vor.u32 %v572_v61, %v570_v0  ;;  %v914_v7 = vsel %vm905_vm3, %v911_v53, %v913_v1  ;;  %v571_v10 = vsel %vm526_vm2, %v567_v2, %v570_v0  ;;  %v586_v15 = vshrl.u32 %v4340_v5, 16  ;;  %v4527_v0 = vld [vmem:[%s4336_s25 + $0x10] sm:$0xff]  }
  0x20   : > { %v916_v11 = vsel %vm905_vm3, %v913_v1, %v915_v3  ;;  %v589_v17 = vshll.u32 %v4353_v9, 16  ;;  %v584_v19 = vrot.slane %v582_v8, 1  ;;  %v917_v20 = vrot.slane %v4406_v26, 1  ;;  %v4539_v8 = vld [vmem:[%s4336_s25 + $0x18] sm:$0xff]  }
  0x21   : > { %v578_v14 = vsel %vm526_vm2, %v574_v4, %v577_v6  ;;  %v581_v21 = vor.u32 %v579_v12, %v577_v6  ;;  %v919_v22 = vrot.slane %v4422_v38, 1  ;;  %v596_v28 = vshll.u32 %v4369_v13, 16  ;;  %v4544_v12 = vld [vmem:[%s4336_s25 + $0x20] sm:$0xff]  }
  0x22   : > { %v588_v23 = vor.u32 %v586_v15, %v584_v19  ;;  %v918_v27 = vsel %vm905_vm3, %v915_v3, %v917_v20  ;;  %v593_v31 = vshrl.u32 %v4353_v9, 16  ;;  %v603_v33 = vshll.u32 %v4380_v16, 16 }
  0x23   : > { %v920_v30 = vsel %vm905_vm3, %v917_v20, %v919_v22  ;;  %v598_v34 = vrot.slane %v596_v28, 1  ;;  %v921_v35 = vrot.slane %v4340_v5, 1  ;;  %v923_v37 = vrot.slane %v4353_v9, 1  ;;  %v4569_v28 = vld [vmem:[%s4336_s25 + $0x30] sm:$0xff]  }
  0x24   : > { %3912 = vmatmul.mubr.msk.bf16.gmra.mrb[8].mxu0 %vm300_vm1, %v4400_v24  ;;  %v591_v24 = vrot.slane %v589_v17, 1  ;;  %v605_v39 = vrot.slane %v603_v33, 1  ;;  %v614_v45 = vshrl.u32 %v4388_v18, 16  ;;  %v617_v46 = vshll.u32 %v4403_v25, 16 }
  0x25   : > { %3928 = vmatmul.mubr.msk.bf16.gmra.mrb[8].mxu1 %vm300_vm1, %v4403_v25  ;;  %3915 = vmatprep.mubr.msk.bf16.mxu0 %vm300_vm1, %v4406_v26  ;;  %v600_v26 = vshrl.u32 %v4369_v13, 16  ;;  %v925_v48 = vrot.slane %v4369_v13, 1  ;;  %v927_v50 = vrot.slane %v4380_v16, 1  ;;  %v625_v58 = vshll.u32 %v4223_v51, 16 }
  0x26   : > { %3933 = vmatprep.mubr.msk.bf16.mxu1 %vm300_vm1, %v536_v29  ;;  %v585_v29 = vsel %vm526_vm2, %v581_v21, %v584_v19  ;;  %v592_v32 = vsel %vm526_vm2, %v588_v23, %v591_v24  ;;  %v595_v36 = vor.u32 %v593_v31, %v591_v24  ;;  %v619_v53 = vrot.slane %v617_v46, 1  ;;  %v4556_v23 = vld [vmem:[%s4336_s25 + $0x28] sm:$0xff]   ;;  %v4561_v24 = vld [vmem:[%s5256_s1 + $0x1c] sm:$0xf] }
  0x27   : > { %v627_v62 = vrot.slane %v625_v58, 1  ;;  %v1604_v15 = vshrl.u32 %v4527_v0, 16  ;;  %v1607_v17 = vshll.u32 %v4539_v8, 16  ;;  %v2044_v20 = vsel %vm343_vm0, %v4437_v47, 0 }
  0x28   : > { %v599_v42 = vsel %vm526_vm2, %v595_v36, %v598_v34  ;;  %v1611_v21 = vshrl.u32 %v4539_v8, 16  ;;  %v1621_v31 = vshll.u32 %v4556_v23, 16  ;;  %v2424_v33 = vsel %vm343_vm0, %v4460_v63, 0 }
  0x2c   : > { %3916 = vmatmul.mubr.msk.bf16.gmra.mrb[12].mxu0 %vm300_vm1, %v4422_v38  ;;  %v602_v38 = vor.u32 %v600_v26, %v598_v34  ;;  %v1618_v26 = vshrl.u32 %v4544_v12, 16  ;;  %v1625_v34 = vshrl.u32 %v4556_v23, 16 }
  0x2d   : > { %3934 = vmatmul.mubr.msk.bf16.vlgmr.msra.gmra.mrb[12].mxu1 %vm300_vm1, %v543_v40  ;;  %3963 = vmatprep.mubr.msk.bf16.mxu0 %vm300_vm1, %v908_v41  ;;  %v922_v40 = vsel %vm905_vm3, %v919_v22, %v921_v35  ;;  %v610_v41 = vshll.u32 %v4388_v18, 16  ;;  %v1614_v22 = vshll.u32 %v4544_v12, 16 }
  0x2e   : > { %3992 = vmatpush3.bf16.msra.mxu1 %v1358_v43  ;;  %3937 = vmatprep.mubr.msk.bf16.mxu1 %vm300_vm1, %v550_v44  ;;  %v924_v43 = vsel %vm905_vm3, %v921_v35, %v923_v37  ;;  %v607_v44 = vshrl.u32 %v4380_v16, 16  ;;  %v606_v5 = vsel %vm526_vm2, %v602_v38, %v605_v39  ;;  %v929_v16 = vrot.slane %v4388_v18, 1  ;;  %v4583_v38 = vld [vmem:[%s4336_s25 + $0x38] sm:$0xff]  }
  0x2f   : > { %4179 = vmatprep.subr.msk.bf16.mxu1 %vm343_vm0, %v4437_v47  ;;  %v612_v9 = vrot.slane %v610_v41, 1  ;;  %v1609_v47 = vrot.slane %v1607_v17, 1  ;;  %v1628_v35 = vshll.u32 %v4569_v28, 16  ;;  %v1639_v46 = vshrl.u32 %v4583_v38, 16 }
  0x30   : > { %v609_v49 = vor.u32 %v607_v44, %v605_v39  ;;  %v930_v2 = vsel %vm905_vm3, %v927_v50, %v929_v16  ;;  %v4588_v39 = vld [vmem:[%s5256_s1 + $0x20] sm:$0xf] }
  0x31   : > { %v616_v52 = vor.u32 %v614_v45, %v612_v9  ;;  %v1630_v41 = vrot.slane %v1628_v35, 1  ;;  %v1973_v35 = vrot.slane %v4527_v0, 1 }
  0x32   : > { %v613_v55 = vsel %vm526_vm2, %v609_v49, %v612_v9  ;;  %v4608_v49 = vld [vmem:[%s4336_s25 + $0x48] sm:$0xff]  }
  0x33   : > { %v620_v13 = vsel %vm526_vm2, %v616_v52, %v619_v53  ;;  %v1653_v58 = vshrl.u32 %v4608_v49, 16 }
  0x34   : > { %3964 = vmatmul.mubr.msk.bf16.vlgmr.msra.gmra.mrb[16].mxu0 %vm300_vm1, %v910_v54  ;;  %v926_v54 = vsel %vm905_vm3, %v923_v37, %v925_v48  ;;  %v1623_v37 = vrot.slane %v1621_v31, 1 }
  0x35   : > { %3938 = vmatmul.mubr.msk.bf16.gmra.mrb[16].mxu1 %vm300_vm1, %v557_v56  ;;  %4022 = vmatpush3.bf16.msra.mxu0 %v1739_v57  ;;  %v928_v56 = vsel %vm905_vm3, %v925_v48, %v927_v50  ;;  %v621_v57 = vshrl.u32 %v4403_v25, 16 }
  0x36   : > { %3941 = vmatprep.mubr.msk.bf16.mxu1 %vm300_vm1, %v564_v59  ;;  %3967 = vmatprep.mubr.msk.bf16.mxu0 %vm300_vm1, %v912_v60  ;;  %v4517_v59 = vld [vmem:[%s4336_s25 + $0x8] sm:$0xff]   ;;  %v931_v60 = vrot.slane %v4403_v25, 1  ;;  %v1600_v25 = vshll.u32 %v4527_v0, 16 }
  0x37   : > { %4180 = vmatprep.subr.msk.bf16.mxu0 %vm343_vm0, %v4460_v63  ;;  %v623_v61 = vor.u32 %v621_v57, %v619_v53  ;;  %v1596_v1 = vshll.u32 %v4517_v59, 16  ;;  %v1594_v18 = vshrl.u32 %v4517_v59, 16  ;;  %v4616_v53 = vld [vmem:[%s4336_s25 + $0x50] sm:$0xff]  }
  0x38   : > { %v932_v3 = vsel %vm905_vm3, %v929_v16, %v931_v60 }
  0x39   : > { %v628_v4 = vsel %vm526_vm2, %v623_v61, %v627_v62  ;;  %v1598_v6 = vrot.slane %v1596_v1, 1 }
  0x3c   : > { %3968 = vmatmul.mubr.msk.bf16.gmra.mrb[20].mxu0 %vm300_vm1, %v914_v7  ;;  %v933_v7 = vrot.slane %v4223_v51, 1 }
  0x3d   : > { %3942 = vmatmul.mubr.msk.bf16.gmra.mrb[20].mxu1 %vm300_vm1, %v571_v10  ;;  %3971 = vmatprep.mubr.msk.bf16.mxu0 %vm300_vm1, %v916_v11  ;;  %v1599_v10 = vor.u32 %v1598_v6, %v1594_v18  ;;  %v1602_v11 = vrot.slane %v1600_v25, 1  ;;  %v1660_v18 = vshrl.u32 %v4616_v53, 16 }
  0x3e   : > { %3945 = vmatprep.mubr.msk.bf16.mxu1 %vm300_vm1, %v578_v14  ;;  %v934_v14 = vsel %vm905_vm3, %v931_v60, %v933_v7  ;;  %v4626_v60 = vld [vmem:[%s4336_s25 + $0x58] sm:$0xff]  }
  0x3f   : > { %v1603_v19 = vsel %vm526_vm2, %v1599_v10, %v1602_v11  ;;  %v1667_v25 = vshrl.u32 %v4626_v60, 16 }
  0x44   : > { %3972 = vmatmul.mubr.msk.bf16.gmra.mrb[24].mxu0 %vm300_vm1, %v918_v27  ;;  %v1606_v27 = vor.u32 %v1604_v15, %v1602_v11  ;;  %v4644_v11 = vld [vmem:[%s4336_s25 + $0x68] sm:$0xff]  }
  0x45   : > { %3946 = vmatmul.mubr.msk.bf16.gmra.mrb[24].mxu1 %vm300_vm1, %v585_v29  ;;  %3975 = vmatprep.mubr.msk.bf16.mxu0 %vm300_vm1, %v920_v30  ;;  %v1613_v29 = vor.u32 %v1611_v21, %v1609_v47  ;;  %v1616_v30 = vrot.slane %v1614_v22, 1 }
  0x46   : > { %3949 = vmatprep.mubr.msk.bf16.mxu1 %vm300_vm1, %v592_v32  ;;  %v1610_v32 = vsel %vm526_vm2, %v1606_v27, %v1609_v47  ;;  %v1681_v47 = vshrl.u32 %v4644_v11, 16 }
  0x47   : > { %v1617_v36 = vsel %vm526_vm2, %v1613_v29, %v1616_v30  ;;  %v1620_v63 = vor.u32 %v1618_v26, %v1616_v30 }
  0x49   : > { %v1624_v44 = vsel %vm526_vm2, %v1620_v63, %v1623_v37 }
  0x4c   : > { %3976 = vmatmul.mubr.msk.bf16.gmra.mrb[28].mxu0 %vm300_vm1, %v922_v40  ;;  %v1627_v40 = vor.u32 %v1625_v34, %v1623_v37  ;;  %v1972_v34 = vrot.slane %v4517_v59, 1 }
  0x4d   : > { %3950 = vmatmul.mubr.msk.bf16.gmra.mrb[28].mxu1 %vm300_vm1, %v599_v42  ;;  %3979 = vmatprep.mubr.msk.bf16.mxu0 %vm300_vm1, %v924_v43  ;;  %v4596_v42 = vld [vmem:[%s4336_s25 + $0x40] sm:$0xff]   ;;  %v1635_v43 = vshll.u32 %v4583_v38, 16 }
  0x4e   : > { %3953 = vmatprep.mubr.msk.bf16.mxu1 %vm300_vm1, %v606_v5  ;;  %v1632_v5 = vshrl.u32 %v4569_v28, 16  ;;  %v1631_v45 = vsel %vm526_vm2, %v1627_v40, %v1630_v41  ;;  %v1642_v9 = vshll.u32 %v4596_v42, 16 }
  0x4f   : > { %v1637_v48 = vrot.slane %v1635_v43, 1 }
  0x50   : > { %v1634_v50 = vor.u32 %v1632_v5, %v1630_v41  ;;  %v1644_v52 = vrot.slane %v1642_v9, 1  ;;  %v1974_v41 = vsel %vm905_vm3, %v1972_v34, %v1973_v35  ;;  %v2805_v9 = vsel %vm343_vm0, %v4561_v24, 0 }
  0x51   : > { %v1641_v51 = vor.u32 %v1639_v46, %v1637_v48 }
  0x53   : > { %v1645_v57 = vsel %vm526_vm2, %v1641_v51, %v1644_v52  ;;  %v3110_v51 = vsel %vm343_vm0, %v4588_v39, 0 }
  0x54   : > { %3980 = vmatmul.mubr.msk.bf16.gmra.mrb[32].mxu0 %vm300_vm1, %v926_v54  ;;  %v1649_v54 = vshll.u32 %v4608_v49, 16 }
  0x55   : > { %3954 = vmatmul.mubr.msk.bf16.gmra.mrb[32].mxu1 %vm300_vm1, %v613_v55  ;;  %3983 = vmatprep.mubr.msk.bf16.mxu0 %vm300_vm1, %v928_v56  ;;  %v1638_v55 = vsel %vm526_vm2, %v1634_v50, %v1637_v48  ;;  %v1646_v56 = vshrl.u32 %v4596_v42, 16  ;;  %v4699_v50 = vld [vmem:[%s4336_s25 + $0x18] sm:$0xff]  }
  0x56   : > { %3957 = vmatprep.mubr.msk.bf16.mxu1 %vm300_vm1, %v620_v13  ;;  %v1656_v13 = vshll.u32 %v4616_v53, 16  ;;  %v1651_v16 = vrot.slane %v1649_v54, 1 }
  0x57   : > { %v1648_v61 = vor.u32 %v1646_v56, %v1644_v52  ;;  %v4705_v52 = vld [vmem:[%s4336_s25 + $0x20] sm:$0xff]  }
  0x58   : > { %v1655_v62 = vor.u32 %v1653_v58, %v1651_v16  ;;  %v1658_v1 = vrot.slane %v1656_v13, 1  ;;  %v4733_v58 = vld [vmem:[%s4336_s25 + $0x38] sm:$0xff]   ;;  %v4736_v13 = vld [vmem:[%s4336_s25 + $0x40] sm:$0xff]  }
  0x5a   : > { %v1659_v6 = vsel %vm526_vm2, %v1655_v62, %v1658_v1  ;;  %v4749_v62 = vld [vmem:[%s4336_s25 + $0x48] sm:$0xff]  }
  0x5c   : > { %3984 = vmatmul.mubr.msk.bf16.gmra.mrb[36].mxu0 %vm300_vm1, %v930_v2  ;;  %v4634_v2 = vld [vmem:[%s4336_s25 + $0x60] sm:$0xff]  }
  0x5d   : > { %3958 = vmatmul.mubr.msk.bf16.gmra.mrb[36].mxu1 %vm300_vm1, %v628_v4  ;;  %3987 = vmatprep.mubr.msk.bf16.mxu0 %vm300_vm1, %v932_v3  ;;  %v1663_v3 = vshll.u32 %v4626_v60, 16  ;;  %v1652_v4 = vsel %vm526_vm2, %v1648_v61, %v1651_v16  ;;  %v1670_v7 = vshll.u32 %v4634_v2, 16  ;;  %v1674_v22 = vshrl.u32 %v4634_v2, 16 }
  0x5e   : > { %3993 = vmatprep.mubr.msk.bf16.mxu1 %vm300_vm1, %v4517_v59 }
  0x5f   : > { %v1665_v10 = vrot.slane %v1663_v3, 1  ;;  %v1672_v17 = vrot.slane %v1670_v7, 1 }
  0x61   : > { %v1669_v15 = vor.u32 %v1667_v25, %v1665_v10  ;;  %v1676_v31 = vor.u32 %v1674_v22, %v1672_v17  ;;  %v4769_v25 = vld [vmem:[%s4336_s25 + $0x60] sm:$0xff]   ;;  %v4786_v22 = vld [vmem:[%s4336_s25 + $0x70] sm:$0xff]  }
  0x63   : > { %v1673_v27 = vsel %vm526_vm2, %v1669_v15, %v1672_v17  ;;  %v2666_v17 = vshll.u32 %v4699_v50, 16 }
  0x64   : > { %3988 = vmatmul.mubr.msk.bf16.gmra.mrb[40].mxu0 %vm300_vm1, %v934_v14  ;;  %v1662_v14 = vor.u32 %v1660_v18, %v1658_v1  ;;  %v4752_v1 = vld [vmem:[%s4336_s25 + $0x50] sm:$0xff]  }
  0x65   : > { %3994 = vmatmul.mubr.msk.bf16.vlgmr.msra.gmra.mrb[40].mxu1 %vm300_vm1, %v4527_v0  ;;  %4023 = vmatprep.mubr.msk.bf16.mxu0 %vm300_vm1, %v1603_v19  ;;  %v4652_v19 = vld [vmem:[%s4336_s25 + $0x70] sm:$0xff]   ;;  %v1975_v0 = vrot.slane %v4539_v8, 1 }
  0x66   : > { %4052 = vmatpush3.bf16.msra.mxu1 %v2044_v20  ;;  %3997 = vmatprep.mubr.msk.bf16.mxu1 %vm300_vm1, %v4539_v8  ;;  %v1677_v20 = vshll.u32 %v4644_v11, 16  ;;  %v1666_v21 = vsel %vm526_vm2, %v1662_v14, %v1665_v10  ;;  %v1684_v29 = vshll.u32 %v4652_v19, 16  ;;  %v1688_v37 = vshrl.u32 %v4652_v19, 16 }
  0x67   : > { %4181 = vmatprep.subr.msk.bf16.mxu1 %vm343_vm0, %v4561_v24  ;;  %v1976_v46 = vsel %vm905_vm3, %v1973_v35, %v1975_v0  ;;  %v1979_v8 = vrot.slane %v4556_v23, 1  ;;  %v3039_v35 = vrot.slane %v4699_v50, 1 }
  0x68   : > { %v1679_v30 = vrot.slane %v1677_v20, 1  ;;  %v2668_v20 = vrot.slane %v2666_v17, 1 }
  0x6a   : > { %v1683_v26 = vor.u32 %v1681_v47, %v1679_v30 }
  0x6c   : > { %4024 = vmatmul.mubr.msk.bf16.vlgmr.msra.gmra.mrb[44].mxu0 %vm300_vm1, %v1610_v32  ;;  %v4665_v32 = vld [vmem:[%s4336_s25 + $0x78] ss:$0 sps:$4 sm:$0x11]  }
  0x6d   : > { %3998 = vmatmul.mubr.msk.bf16.gmra.mrb[44].mxu1 %vm300_vm1, %v4544_v12  ;;  %4082 = vmatpush3.bf16.msra.mxu0 %v2424_v33  ;;  %v1686_v33 = vrot.slane %v1684_v29, 1  ;;  %v1692_v63 = vshll.u32 %v4665_v32, 16  ;;  %v2670_v29 = vshrl.u32 %v4699_v50, 16 }
  0x6e   : > { %4001 = vmatprep.mubr.msk.bf16.mxu1 %vm300_vm1, %v4556_v23  ;;  %4027 = vmatprep.mubr.msk.bf16.mxu0 %vm300_vm1, %v1617_v36  ;;  %v1680_v36 = vsel %vm526_vm2, %v1676_v31, %v1679_v30  ;;  %v1983_v23 = vrot.slane %v4583_v38, 1  ;;  %v2677_v31 = vshrl.u32 %v4705_v52, 16 }
  0x6f   : > { %4182 = vmatprep.subr.msk.bf16.mxu0 %vm343_vm0, %v4588_v39  ;;  %v1687_v40 = vsel %vm526_vm2, %v1683_v26, %v1686_v33  ;;  %v1690_v59 = vor.u32 %v1688_v37, %v1686_v33  ;;  %v1694_v43 = vrot.slane %v1692_v63, 1  ;;  %v4717_v39 = vld [vmem:[%s4336_s25 + $0x28] sm:$0xff]   ;;  %v2672_v33 = vor.u32 %v2670_v29, %v2668_v20  ;;  %v4803_v63 = vld [vmem:[%s4336_s25 + $0x78] sm:$0xff]  }
  0x70   : > { %v2680_v26 = vshll.u32 %v4717_v39, 16  ;;  %v2729_v29 = vshll.u32 %v4769_v25, 16 }
  0x71   : > { %v1695_v5 = vsel %vm526_vm2, %v1690_v59, %v1694_v43  ;;  %v2684_v43 = vshrl.u32 %v4717_v39, 16 }
  0x72   : > { %v2682_v37 = vrot.slane %v2680_v26, 1 }
  0x74   : > { %4028 = vmatmul.mubr.msk.bf16.gmra.mrb[48].mxu0 %vm300_vm1, %v1624_v44  ;;  %v1977_v44 = vrot.slane %v4544_v12, 1  ;;  %v1981_v12 = vrot.slane %v4569_v28, 1 }
  0x75   : > { %4002 = vmatmul.mubr.msk.bf16.gmra.mrb[48].mxu1 %vm300_vm1, %v4569_v28  ;;  %4031 = vmatprep.mubr.msk.bf16.mxu0 %vm300_vm1, %v1631_v45  ;;  %v4685_v45 = vld [vmem:[%s4336_s25 + $0x10] sm:$0xff]   ;;  %v1985_v28 = vrot.slane %v4596_v42, 1 }
  0x76   : > { %4005 = vmatprep.mubr.msk.bf16.mxu1 %vm300_vm1, %v4583_v38  ;;  %v1978_v48 = vsel %vm905_vm3, %v1975_v0, %v1977_v44  ;;  %v1980_v24 = vsel %vm905_vm3, %v1977_v44, %v1979_v8  ;;  %v1982_v54 = vsel %vm905_vm3, %v1979_v8, %v1981_v12  ;;  %v1984_v56 = vsel %vm905_vm3, %v1981_v12, %v1983_v23 }
  0x77   : > { %v1987_v38 = vrot.slane %v4608_v49, 1  ;;  %v2662_v18 = vshll.u32 %v4685_v45, 16  ;;  %v2660_v14 = vshrl.u32 %v4685_v45, 16  ;;  %v3038_v34 = vrot.slane %v4685_v45, 1 }
  0x79   : > { %v1988_v16 = vsel %vm905_vm3, %v1985_v28, %v1987_v38  ;;  %v2664_v15 = vrot.slane %v2662_v18, 1  ;;  %v3040_v59 = vsel %vm905_vm3, %v3038_v34, %v3039_v35 }
  0x7c   : > { %4032 = vmatmul.mubr.msk.bf16.gmra.mrb[52].mxu0 %vm300_vm1, %v1638_v55  ;;  %v4720_v55 = vld [vmem:[%s4336_s25 + $0x30] sm:$0xff]  }
  0x7d   : > { %4006 = vmatmul.mubr.msk.bf16.gmra.mrb[52].mxu1 %vm300_vm1, %v4596_v42  ;;  %4035 = vmatprep.mubr.msk.bf16.mxu0 %vm300_vm1, %v1645_v57  ;;  %v1986_v57 = vsel %vm905_vm3, %v1983_v23, %v1985_v28  ;;  %v1989_v42 = vrot.slane %v4616_v53, 1  ;;  %v2691_v44 = vshrl.u32 %v4720_v55, 16  ;;  %v2698_v23 = vshrl.u32 %v4733_v58, 16 }
  0x7e   : > { %4009 = vmatprep.mubr.msk.bf16.mxu1 %vm300_vm1, %v4608_v49  ;;  %v1991_v49 = vrot.slane %v4626_v60, 1 }
  0x7f   : > { %v1990_v61 = vsel %vm905_vm3, %v1987_v38, %v1989_v42 }
  0x80   : > { %v1992_v3 = vsel %vm905_vm3, %v1989_v42, %v1991_v49  ;;  %v3047_v42 = vrot.slane %v4733_v58, 1 }
  0x84   : > { %4036 = vmatmul.mubr.msk.bf16.gmra.mrb[56].mxu0 %vm300_vm1, %v1652_v4 }
  0x85   : > { %4010 = vmatmul.mubr.msk.bf16.gmra.mrb[56].mxu1 %vm300_vm1, %v4616_v53  ;;  %4039 = vmatprep.mubr.msk.bf16.mxu0 %vm300_vm1, %v1659_v6  ;;  %v1993_v53 = vrot.slane %v4634_v2, 1  ;;  %v4766_v6 = vld [vmem:[%s4336_s25 + $0x58] sm:$0xff]  }
  0x86   : > { %4013 = vmatprep.mubr.msk.bf16.mxu1 %vm300_vm1, %v4626_v60  ;;  %v1995_v60 = vrot.slane %v4644_v11, 1  ;;  %v2722_v18 = vshll.u32 %v4766_v6, 16 }
  0x87   : > { %v1994_v4 = vsel %vm905_vm3, %v1991_v49, %v1993_v53 }
  0x88   : > { %v1996_v7 = vsel %vm905_vm3, %v1993_v53, %v1995_v60  ;;  %v2715_v53 = vshll.u32 %v4752_v1, 16 }
  0x8c   : > { %4040 = vmatmul.mubr.msk.bf16.gmra.mrb[60].mxu0 %vm300_vm1, %v1666_v21  ;;  %v4783_v21 = vld [vmem:[%s4336_s25 + $0x68] sm:$0xff]  }
  0x8d   : > { %4014 = vmatmul.mubr.msk.bf16.gmra.mrb[60].mxu1 %vm300_vm1, %v4634_v2  ;;  %4043 = vmatprep.mubr.msk.bf16.mxu0 %vm300_vm1, %v1673_v27  ;;  %v1997_v2 = vrot.slane %v4652_v19, 1  ;;  %v2673_v27 = vshll.u32 %v4705_v52, 16 }
  0x8e   : > { %4017 = vmatprep.mubr.msk.bf16.mxu1 %vm300_vm1, %v4644_v11  ;;  %v1999_v11 = vrot.slane %v4665_v32, 1 }
  0x8f   : > { %v1998_v10 = vsel %vm905_vm3, %v1995_v60, %v1997_v2  ;;  %v2675_v32 = vrot.slane %v2673_v27, 1  ;;  %v2712_v60 = vshrl.u32 %v4749_v62, 16 }
  0x90   : > { %v2000_v47 = vsel %vm905_vm3, %v1997_v2, %v1999_v11  ;;  %v2724_v11 = vrot.slane %v2722_v18, 1  ;;  %v2754_v18 = vshrl.u32 %v4803_v63, 16 }
  0x94   : > { %4044 = vmatmul.mubr.msk.bf16.gmra.mrb[64].mxu0 %vm300_vm1, %v1680_v36  ;;  %v2679_v36 = vor.u32 %v2677_v31, %v2675_v32 }
  0x95   : > { %4018 = vmatmul.mubr.msk.bf16.gmra.mrb[64].mxu1 %vm300_vm1, %v4652_v19  ;;  %4047 = vmatprep.mubr.msk.bf16.mxu0 %vm300_vm1, %v1687_v40  ;;  %v2665_v19 = vor.u32 %v2664_v15, %v2660_v14  ;;  %v2687_v40 = vshll.u32 %v4720_v55, 16  ;;  %v3051_v14 = vrot.slane %v4749_v62, 1 }
  0x96   : > { %4053 = vmatprep.mubr.msk.bf16.mxu1 %vm300_vm1, %v1974_v41  ;;  %v2676_v41 = vsel %vm526_vm2, %v2672_v33, %v2675_v32  ;;  %v2683_v0 = vsel %vm526_vm2, %v2679_v36, %v2682_v37  ;;  %v2726_v32 = vshrl.u32 %v4766_v6, 16  ;;  %v2736_v36 = vshll.u32 %v4783_v21, 16 }
  0x97   : > { %v2669_v30 = vsel %vm526_vm2, %v2665_v19, %v2668_v20 }
  0x9c   : > { %4048 = vmatmul.mubr.msk.bf16.gmra.mrb[68].mxu0 %vm300_vm1, %v1695_v5  ;;  %v2694_v5 = vshll.u32 %v4733_v58, 16 }
  0x9d   : > { %4054 = vmatmul.mubr.msk.bf16.vlgmr.msra.gmra.mrb[68].mxu1 %vm300_vm1, %v1976_v46  ;;  %4083 = vmatprep.mubr.msk.bf16.mxu0 %vm300_vm1, %v4685_v45  ;;  %v2689_v45 = vrot.slane %v2687_v40, 1  ;;  %v3041_v46 = vrot.slane %v4705_v52, 1  ;;  %v3053_v40 = vrot.slane %v4752_v1, 1 }
  0x9e   : > { %4112 = vmatpush3.bf16.msra.mxu1 %v2805_v9  ;;  %4057 = vmatprep.mubr.msk.bf16.mxu1 %vm300_vm1, %v1978_v48  ;;  %v2686_v9 = vor.u32 %v2684_v43, %v2682_v37  ;;  %v3043_v48 = vrot.slane %v4717_v39, 1  ;;  %v2696_v12 = vrot.slane %v2694_v5, 1  ;;  %v2731_v37 = vrot.slane %v2729_v29, 1 }
  0x9f   : > { %v2693_v8 = vor.u32 %v2691_v44, %v2689_v45  ;;  %v2738_v44 = vrot.slane %v2736_v36, 1 }
  0xa0   : > { %v2700_v38 = vor.u32 %v2698_v23, %v2696_v12  ;;  %v2747_v23 = vshrl.u32 %v4786_v22, 16 }
  0xa1   : > { %v2697_v28 = vsel %vm526_vm2, %v2693_v8, %v2696_v12 }
  0xa4   : > { %4084 = vmatmul.mubr.msk.bf16.vlgmr.msra.gmra.mrb[72].mxu0 %vm300_vm1, %v4699_v50  ;;  %v3042_v50 = vsel %vm905_vm3, %v3039_v35, %v3041_v46  ;;  %v2733_v35 = vshrl.u32 %v4769_v25, 16 }
  0xa5   : > { %4058 = vmatmul.mubr.msk.bf16.gmra.mrb[72].mxu1 %vm300_vm1, %v1980_v24  ;;  %4142 = vmatpush3.bf16.msra.mxu0 %v3110_v51  ;;  %v2701_v24 = vshll.u32 %v4736_v13, 16  ;;  %v2690_v51 = vsel %vm526_vm2, %v2686_v9, %v2689_v45 }
  0xa6   : > { %4061 = vmatprep.mubr.msk.bf16.mxu1 %vm300_vm1, %v1982_v54  ;;  %4087 = vmatprep.mubr.msk.bf16.mxu0 %vm300_vm1, %v4705_v52  ;;  %v3044_v54 = vsel %vm905_vm3, %v3041_v46, %v3043_v48  ;;  %v2705_v52 = vshrl.u32 %v4736_v13, 16 }
  0xac   : > { %4088 = vmatmul.mubr.msk.bf16.gmra.mrb[76].mxu0 %vm300_vm1, %v4717_v39  ;;  %v2703_v39 = vrot.slane %v2701_v24, 1  ;;  %v2740_v24 = vshrl.u32 %v4783_v21, 16 }
  0xad   : > { %4062 = vmatmul.mubr.msk.bf16.gmra.mrb[76].mxu1 %vm300_vm1, %v1984_v56  ;;  %4091 = vmatprep.mubr.msk.bf16.mxu0 %vm300_vm1, %v4720_v55  ;;  %v2708_v56 = vshll.u32 %v4749_v62, 16 }
  0xae   : > { %4065 = vmatprep.mubr.msk.bf16.mxu1 %vm300_vm1, %v1986_v57  ;;  %v3045_v57 = vrot.slane %v4720_v55, 1  ;;  %v2719_v55 = vshrl.u32 %v4752_v1, 16 }
  0xb0   : > { %v3046_v49 = vsel %vm905_vm3, %v3043_v48, %v3045_v57  ;;  %v2743_v48 = vshll.u32 %v4786_v22, 16 }
  0xb4   : > { %4092 = vmatmul.mubr.msk.bf16.gmra.mrb[80].mxu0 %vm300_vm1, %v4733_v58  ;;  %v2717_v58 = vrot.slane %v2715_v53, 1 }
  0xb5   : > { %4066 = vmatmul.mubr.msk.bf16.gmra.mrb[80].mxu1 %vm300_vm1, %v1988_v16  ;;  %4095 = vmatprep.mubr.msk.bf16.mxu0 %vm300_vm1, %v4736_v13  ;;  %v2707_v16 = vor.u32 %v2705_v52, %v2703_v39  ;;  %v2745_v52 = vrot.slane %v2743_v48, 1 }
  0xb6   : > { %4069 = vmatprep.mubr.msk.bf16.mxu1 %vm300_vm1, %v1990_v61  ;;  %v2710_v61 = vrot.slane %v2708_v56, 1  ;;  %v2721_v17 = vor.u32 %v2719_v55, %v2717_v58  ;;  %v3057_v56 = vrot.slane %v4769_v25, 1 }
  0xb8   : > { %v2711_v2 = vsel %vm526_vm2, %v2707_v16, %v2710_v61  ;;  %v2725_v34 = vsel %vm526_vm2, %v2721_v17, %v2724_v11  ;;  %v2749_v16 = vor.u32 %v2747_v23, %v2745_v52 }
  0xbc   : > { %4096 = vmatmul.mubr.msk.bf16.gmra.mrb[84].mxu0 %vm300_vm1, %v4749_v62 }
  0xbd   : > { %4070 = vmatmul.mubr.msk.bf16.gmra.mrb[84].mxu1 %vm300_vm1, %v1992_v3  ;;  %4099 = vmatprep.mubr.msk.bf16.mxu0 %vm300_vm1, %v4752_v1  ;;  %v2704_v3 = vsel %vm526_vm2, %v2700_v38, %v2703_v39  ;;  %v3054_v1 = vsel %vm905_vm3, %v3051_v14, %v3053_v40  ;;  %v2742_v39 = vor.u32 %v2740_v24, %v2738_v44  ;;  %v4892_v38 = vld [vmem:[%s4336_s25 + $0x80] ss:$0 sps:$4 sm:$0x11]  }
  0xbe   : > { %4073 = vmatprep.mubr.msk.bf16.mxu1 %vm300_vm1, %v1994_v4  ;;  %v3048_v4 = vsel %vm905_vm3, %v3045_v57, %v3047_v42  ;;  %v3059_v57 = vrot.slane %v4783_v21, 1 }
  0xc0   : > { %v3060_v55 = vsel %vm905_vm3, %v3057_v56, %v3059_v57 }
  0xc4   : > { %4100 = vmatmul.mubr.msk.bf16.gmra.mrb[88].mxu0 %vm300_vm1, %v4766_v6 }
  0xc5   : > { %4074 = vmatmul.mubr.msk.bf16.gmra.mrb[88].mxu1 %vm300_vm1, %v1996_v7  ;;  %4103 = vmatprep.mubr.msk.bf16.mxu0 %vm300_vm1, %v4769_v25  ;;  %v3049_v7 = vrot.slane %v4736_v13, 1 }
  0xc6   : > { %4077 = vmatprep.mubr.msk.bf16.mxu1 %vm300_vm1, %v1998_v10  ;;  %v2714_v10 = vor.u32 %v2712_v60, %v2710_v61 }
  0xc7   : > { %v3050_v13 = vsel %vm905_vm3, %v3047_v42, %v3049_v7  ;;  %v3052_v26 = vsel %vm905_vm3, %v3049_v7, %v3051_v14  ;;  %v3061_v14 = vrot.slane %v4786_v22, 1 }
  0xc8   : > { %v2718_v31 = vsel %vm526_vm2, %v2714_v10, %v2717_v58  ;;  %v2758_v58 = vshll.u32 %v4892_v38, 16 }
  0xca   : > { %v2760_v17 = vrot.slane %v2758_v58, 1 }
  0xcc   : > { %4104 = vmatmul.mubr.msk.bf16.gmra.mrb[92].mxu0 %vm300_vm1, %v4783_v21 }
  0xcd   : > { %4078 = vmatmul.mubr.msk.bf16.gmra.mrb[92].mxu1 %vm300_vm1, %v2000_v47  ;;  %4107 = vmatprep.mubr.msk.bf16.mxu0 %vm300_vm1, %v4786_v22  ;;  %v3062_v22 = vsel %vm905_vm3, %v3059_v57, %v3061_v14 }
  0xce   : > { %4113 = vmatprep.mubr.msk.bf16.mxu1 %vm300_vm1, %v2669_v30 }
  0xd4   : > { %4108 = vmatmul.mubr.msk.bf16.gmra.mrb[96].mxu0 %vm300_vm1, %v4803_v63 }
  0xd5   : > { %4114 = vmatmul.mubr.msk.bf16.vlgmr.msra.gmra.mrb[96].mxu1 %vm300_vm1, %v2676_v41  ;;  %4143 = vmatprep.mubr.msk.bf16.mxu0 %vm300_vm1, %v3040_v59  ;;  %v2728_v41 = vor.u32 %v2726_v32, %v2724_v11  ;;  %v3055_v59 = vrot.slane %v4766_v6, 1  ;;  %v3063_v11 = vrot.slane %v4803_v63, 1 }
  0xd6   : > { %4117 = vmatprep.mubr.msk.bf16.mxu1 %vm300_vm1, %v2683_v0  ;;  %v2735_v0 = vor.u32 %v2733_v35, %v2731_v37 }
  0xd7   : > { %v2732_v12 = vsel %vm526_vm2, %v2728_v41, %v2731_v37  ;;  %v3065_v41 = vrot.slane %v4892_v38, 1 }
  0xdc   : > { %4144 = vmatmul.mubr.msk.bf16.vlgmr.msra.gmra.mrb[100].mxu0 %vm300_vm1, %v3042_v50  ;;  %v3056_v50 = vsel %vm905_vm3, %v3053_v40, %v3055_v59 }
  0xdd   : > { %4118 = vmatmul.mubr.msk.bf16.gmra.mrb[100].mxu1 %vm300_vm1, %v2690_v51  ;;  %4147 = vmatprep.mubr.msk.bf16.mxu0 %vm300_vm1, %v3044_v54  ;;  %v2739_v54 = vsel %vm526_vm2, %v2735_v0, %v2738_v44 }
  0xde   : > { %4121 = vmatprep.mubr.msk.bf16.mxu1 %vm300_vm1, %v2697_v28  ;;  %v2750_v28 = vshll.u32 %v4803_v63, 16 }
  0xe0   : > { %v2752_v61 = vrot.slane %v2750_v28, 1 }
  0xe2   : > { %v2753_v10 = vsel %vm526_vm2, %v2749_v16, %v2752_v61 }
  0xe4   : > { %4148 = vmatmul.mubr.msk.bf16.gmra.mrb[104].mxu0 %vm300_vm1, %v3046_v49 }
  0xe5   : > { %4122 = vmatmul.mubr.msk.bf16.gmra.mrb[104].mxu1 %vm300_vm1, %v2704_v3  ;;  %4151 = vmatprep.mubr.msk.bf16.mxu0 %vm300_vm1, %v3048_v4  ;;  %v3058_v4 = vsel %vm905_vm3, %v3055_v59, %v3057_v56 }
  0xe6   : > { %4125 = vmatprep.mubr.msk.bf16.mxu1 %vm300_vm1, %v2711_v2  ;;  %v2746_v2 = vsel %vm526_vm2, %v2742_v39, %v2745_v52 }
  0xe7   : > { %v3905_v15 = vpop.f32.mrb[0].mxu0 }
  0xe8   : > { %495 = vst.msk [vmem:[#allocation2 + $0x10] sm:$0xff] %vm492_vm4, %v3905_v15  ;;  %v3921_v19 = vpop.f32.mrb[0].mxu1  ;;  %v381_v20 = vpop.f32.mrb[1].mxu0  ;;  %v2756_v15 = vor.u32 %v2754_v18, %v2752_v61 }
  0xe9   : > { %511 = vst.msk [vmem:[#allocation2 + $0x90] sm:$0xff] %vm492_vm4, %v3921_v19  ;;  %493 = vst.msk [vmem:[#allocation2] sm:$0xff] %vm492_vm4, %v381_v20  ;;  %v445_v27 = vpop.f32.mrb[1].mxu1  ;;  %v3906_v47 = vpop.f32.mrb[2].mxu0 }
  0xea   : > { %509 = vst.msk [vmem:[#allocation2 + $0x80] sm:$0xff] %vm492_vm4, %v445_v27  ;;  %496 = vst.msk [vmem:[#allocation2 + $0x18] sm:$0xff] %vm492_vm4, %v3906_v47  ;;  %v3922_v62 = vpop.f32.mrb[2].mxu1  ;;  %v384_v30 = vpop.f32.mrb[3].mxu0 }
  0xeb   : > { %512 = vst.msk [vmem:[#allocation2 + $0x98] sm:$0xff] %vm492_vm4, %v3922_v62  ;;  %494 = vst.msk [vmem:[#allocation2 + $0x8] sm:$0xff] %vm492_vm4, %v384_v30  ;;  %v448_v33 = vpop.f32.mrb[3].mxu1 }
  0xec   : > { %510 = vst.msk [vmem:[#allocation2 + $0x88] sm:$0xff] %vm492_vm4, %v448_v33  ;;  %4152 = vmatmul.mubr.msk.bf16.gmra.mrb[108].mxu0 %vm300_vm1, %v3050_v13  ;;  %v2761_v33 = vsel %vm526_vm2, %v2756_v15, %v2760_v17 }
  0xed   : > { %4126 = vmatmul.mubr.msk.bf16.gmra.mrb[108].mxu1 %vm300_vm1, %v2718_v31  ;;  %4155 = vmatprep.mubr.msk.bf16.mxu0 %vm300_vm1, %v3052_v26 }
  0xee   : > { %4129 = vmatprep.mubr.msk.bf16.mxu1 %vm300_vm1, %v2725_v34  ;;  %v3064_v34 = vsel %vm905_vm3, %v3061_v14, %v3063_v11 }
  0xef   : > { %v3909_v43 = vpop.f32.mrb[4].mxu0  ;;  %v821_v27 = vld [vmem:[#allocation2 + $0x10] sm:$0xff] }
  0xf0   : > { %499 = vst.msk [vmem:[#allocation2 + $0x30] sm:$0xff] %vm492_vm4, %v3909_v43  ;;  %v3925_v5 = vpop.f32.mrb[4].mxu1  ;;  %v397_v45 = vpop.f32.mrb[5].mxu0  ;;  %v819_v62 = vld [vmem:[#allocation2] sm:$0xff] }
  0xf1   : > { %515 = vst.msk [vmem:[#allocation2 + $0xb0] sm:$0xff] %vm492_vm4, %v3925_v5  ;;  %497 = vst.msk [vmem:[#allocation2 + $0x20] sm:$0xff] %vm492_vm4, %v397_v45  ;;  %v461_v46 = vpop.f32.mrb[5].mxu1  ;;  %v3910_v9 = vpop.f32.mrb[6].mxu0  ;;  %v822_v32 = vld [vmem:[#allocation2 + $0x18] sm:$0xff] }
  0xf2   : > { %513 = vst.msk [vmem:[#allocation2 + $0xa0] sm:$0xff] %vm492_vm4, %v461_v46  ;;  %500 = vst.msk [vmem:[#allocation2 + $0x38] sm:$0xff] %vm492_vm4, %v3910_v9  ;;  %v3926_v6 = vpop.f32.mrb[6].mxu1  ;;  %v400_v8 = vpop.f32.mrb[7].mxu0  ;;  %v820_v37 = vld [vmem:[#allocation2 + $0x8] sm:$0xff] }
  0xf3   : > { %516 = vst.msk [vmem:[#allocation2 + $0xb8] sm:$0xff] %vm492_vm4, %v3926_v6  ;;  %498 = vst.msk [vmem:[#allocation2 + $0x28] sm:$0xff] %vm492_vm4, %v400_v8  ;;  %v464_v51 = vpop.f32.mrb[7].mxu1 }
  0xf4   : > { %514 = vst.msk [vmem:[#allocation2 + $0xa8] sm:$0xff] %vm492_vm4, %v464_v51  ;;  %4156 = vmatmul.mubr.msk.bf16.gmra.mrb[112].mxu0 %vm300_vm1, %v3054_v1  ;;  %v3066_v1 = vsel %vm905_vm3, %v3063_v11, %v3065_v41 }
  0xf5   : > { %4130 = vmatmul.mubr.msk.bf16.gmra.mrb[112].mxu1 %vm300_vm1, %v2732_v12  ;;  %4159 = vmatprep.mubr.msk.bf16.mxu0 %vm300_vm1, %v3056_v50 }
  0xf6   : > { %4133 = vmatprep.mubr.msk.bf16.mxu1 %vm300_vm1, %v2739_v54 }
  0xf7   : > { %v3913_v42 = vpop.f32.mrb[8].mxu0  ;;  %v825_v0 = vld [vmem:[#allocation2 + $0x30] sm:$0xff] }
  0xf8   : > { %503 = vst.msk [vmem:[#allocation2 + $0x50] sm:$0xff] %vm492_vm4, %v3913_v42  ;;  %v3929_v49 = vpop.f32.mrb[8].mxu1  ;;  %v413_v53 = vpop.f32.mrb[9].mxu0  ;;  %v823_v46 = vld [vmem:[#allocation2 + $0x20] sm:$0xff] }
  0xf9   : > { %519 = vst.msk [vmem:[#allocation2 + $0xd0] sm:$0xff] %vm492_vm4, %v3929_v49  ;;  %501 = vst.msk [vmem:[#allocation2 + $0x40] sm:$0xff] %vm492_vm4, %v413_v53  ;;  %v477_v3 = vpop.f32.mrb[9].mxu1  ;;  %v3914_v25 = vpop.f32.mrb[10].mxu0  ;;  %v826_v12 = vld [vmem:[#allocation2 + $0x38] sm:$0xff] }
  0xfa   : > { %517 = vst.msk [vmem:[#allocation2 + $0xc0] sm:$0xff] %vm492_vm4, %v477_v3  ;;  %504 = vst.msk [vmem:[#allocation2 + $0x58] sm:$0xff] %vm492_vm4, %v3914_v25  ;;  %v3930_v21 = vpop.f32.mrb[10].mxu1  ;;  %v416_v60 = vpop.f32.mrb[11].mxu0  ;;  %v824_v28 = vld [vmem:[#allocation2 + $0x28] sm:$0xff] }
  0xfb   : > { %520 = vst.msk [vmem:[#allocation2 + $0xd8] sm:$0xff] %vm492_vm4, %v3930_v21  ;;  %502 = vst.msk [vmem:[#allocation2 + $0x48] sm:$0xff] %vm492_vm4, %v416_v60  ;;  %v480_v7 = vpop.f32.mrb[11].mxu1 }
  0xfc   : > { %518 = vst.msk [vmem:[#allocation2 + $0xc8] sm:$0xff] %vm492_vm4, %v480_v7  ;;  %4160 = vmatmul.mubr.msk.bf16.gmra.mrb[116].mxu0 %vm300_vm1, %v3058_v4 }
  0xfd   : > { %4134 = vmatmul.mubr.msk.bf16.gmra.mrb[116].mxu1 %vm300_vm1, %v2746_v2  ;;  %4163 = vmatprep.mubr.msk.bf16.mxu0 %vm300_vm1, %v3060_v55 }
  0xfe   : > { %4137 = vmatprep.mubr.msk.bf16.mxu1 %vm300_vm1, %v2753_v10 }
  0xff   : > { %v3917_v19 = vpop.f32.mrb[12].mxu0  ;;  %v829_v49 = vld [vmem:[#allocation2 + $0x50] sm:$0xff] }
 0x100   : > { %507 = vst.msk [vmem:[#allocation2 + $0x70] sm:$0xff] %vm492_vm4, %v3917_v19  ;;  %v3935_v20 = vpop.f32.mrb[12].mxu1  ;;  %v429_v47 = vpop.f32.mrb[13].mxu0  ;;  %v827_v4 = vld [vmem:[#allocation2 + $0x40] sm:$0xff] }
 0x101   : > { %v849_v13 = vadd.f32 %v3935_v20, %v821_v27  ;;  %505 = vst.msk [vmem:[#allocation2 + $0x60] sm:$0xff] %vm492_vm4, %v429_v47  ;;  %v708_v29 = vpop.f32.mrb[13].mxu1  ;;  %v3918_v30 = vpop.f32.mrb[14].mxu0  ;;  %v830_v18 = vld [vmem:[#allocation2 + $0x58] sm:$0xff] }
 0x102   : > { %v847_v31 = vadd.f32 %v819_v62, %v708_v29  ;;  %508 = vst.msk [vmem:[#allocation2 + $0x78] sm:$0xff] %vm492_vm4, %v3918_v30  ;;  %v3936_v26 = vpop.f32.mrb[14].mxu1  ;;  %v432_v63 = vpop.f32.mrb[15].mxu0  ;;  %v828_v17 = vld [vmem:[#allocation2 + $0x48] sm:$0xff] }
 0x103   : > { %877 = vst.msk [vmem:[#allocation2 + $0x10] sm:$0xff] %vm492_vm4, %v849_v13  ;;  %v850_v35 = vadd.f32 %v3936_v26, %v822_v32  ;;  %506 = vst.msk [vmem:[#allocation2 + $0x68] sm:$0xff] %vm492_vm4, %v432_v63  ;;  %v711_v36 = vpop.f32.mrb[15].mxu1 }
 0x104   : > { %875 = vst.msk [vmem:[#allocation2] sm:$0xff] %vm492_vm4, %v847_v31  ;;  %v848_v40 = vadd.f32 %v820_v37, %v711_v36  ;;  %4164 = vmatmul.mubr.msk.bf16.gmra.mrb[120].mxu0 %vm300_vm1, %v3062_v22 }
 0x105   : > { %878 = vst.msk [vmem:[#allocation2 + $0x18] sm:$0xff] %vm492_vm4, %v850_v35  ;;  %4138 = vmatmul.mubr.msk.bf16.gmra.mrb[120].mxu1 %vm300_vm1, %v2761_v33  ;;  %4167 = vmatprep.mubr.msk.bf16.mxu0 %vm300_vm1, %v3064_v34 }
 0x106   : > { %876 = vst.msk [vmem:[#allocation2 + $0x8] sm:$0xff] %vm492_vm4, %v848_v40 }
 0x107   : > { %v3965_v59 = vpop.f32.mrb[16].mxu0  ;;  %v833_v30 = vld [vmem:[#allocation2 + $0x70] sm:$0xff] }
 0x108   : > { %v3939_v43 = vpop.f32.mrb[16].mxu1  ;;  %v1014_v44 = vpop.f32.mrb[17].mxu0  ;;  %v831_v32 = vld [vmem:[#allocation2 + $0x60] sm:$0xff] }
 0x109   : > { %v853_v5 = vadd.f32 %v3939_v43, %v825_v0  ;;  %v724_v45 = vpop.f32.mrb[17].mxu1  ;;  %v3966_v9 = vpop.f32.mrb[18].mxu0  ;;  %v834_v36 = vld [vmem:[#allocation2 + $0x78] sm:$0xff] }
 0x10a   : > { %v1127_v48 = vld [vmem:[#allocation2 + $0x10] sm:$0xff]  ;;  %v851_v6 = vadd.f32 %v823_v46, %v724_v45  ;;  %v3940_v8 = vpop.f32.mrb[18].mxu1  ;;  %v1017_v50 = vpop.f32.mrb[19].mxu0  ;;  %v832_v0 = vld [vmem:[#allocation2 + $0x68] sm:$0xff] }
 0x10b   : > { %881 = vst.msk [vmem:[#allocation2 + $0x30] sm:$0xff] %vm492_vm4, %v853_v5  ;;  %v1155_v24 = vadd.f32 %v3965_v59, %v1127_v48  ;;  %v1125_v51 = vld [vmem:[#allocation2] sm:$0xff]  ;;  %v854_v54 = vadd.f32 %v3940_v8, %v826_v12  ;;  %v727_v23 = vpop.f32.mrb[19].mxu1  ;;  %v837_v8 = vld [vmem:[#allocation2 + $0x90] sm:$0xff] }
 0x10c   : > { %879 = vst.msk [vmem:[#allocation2 + $0x20] sm:$0xff] %vm492_vm4, %v851_v6  ;;  %v1153_v52 = vadd.f32 %v1125_v51, %v1014_v44  ;;  %v1128_v56 = vld [vmem:[#allocation2 + $0x18] sm:$0xff]  ;;  %v852_v39 = vadd.f32 %v824_v28, %v727_v23  ;;  %4168 = vmatmul.mubr.msk.bf16.gmra.mrb[124].mxu0 %vm300_vm1, %v3066_v1  ;;  %v835_v51 = vld [vmem:[#allocation2 + $0x80] sm:$0xff] }
 0x10d   : > { %1183 = vst.msk [vmem:[#allocation2 + $0x10] sm:$0xff] %vm492_vm4, %v1155_v24  ;;  %882 = vst.msk [vmem:[#allocation2 + $0x38] sm:$0xff] %vm492_vm4, %v854_v54  ;;  %v1156_v57 = vadd.f32 %v3966_v9, %v1128_v56  ;;  %v1126_v38 = vld [vmem:[#allocation2 + $0x8] sm:$0xff]  ;;  %v838_v56 = vld [vmem:[#allocation2 + $0x98] sm:$0xff] }
 0x10e   : > { %1181 = vst.msk [vmem:[#allocation2] sm:$0xff] %vm492_vm4, %v1153_v52  ;;  %880 = vst.msk [vmem:[#allocation2 + $0x28] sm:$0xff] %vm492_vm4, %v852_v39  ;;  %v1154_v42 = vadd.f32 %v1126_v38, %v1017_v50 }
 0x10f   : > { %1184 = vst.msk [vmem:[#allocation2 + $0x18] sm:$0xff] %vm492_vm4, %v1156_v57  ;;  %v3969_v16 = vpop.f32.mrb[20].mxu0 }
 0x110   : > { %1182 = vst.msk [vmem:[#allocation2 + $0x8] sm:$0xff] %vm492_vm4, %v1154_v42  ;;  %v3943_v61 = vpop.f32.mrb[20].mxu1  ;;  %v1030_v53 = vpop.f32.mrb[21].mxu0 }
 0x111   : > { %v857_v3 = vadd.f32 %v3943_v61, %v829_v49  ;;  %v740_v25 = vpop.f32.mrb[21].mxu1  ;;  %v3970_v21 = vpop.f32.mrb[22].mxu0  ;;  %v836_v61 = vld [vmem:[#allocation2 + $0x88] sm:$0xff] }
 0x112   : > { %v1131_v60 = vld [vmem:[#allocation2 + $0x30] sm:$0xff]  ;;  %v855_v2 = vadd.f32 %v827_v4, %v740_v25  ;;  %v3944_v55 = vpop.f32.mrb[22].mxu1  ;;  %v1033_v58 = vpop.f32.mrb[23].mxu0 }
 0x113   : > { %885 = vst.msk [vmem:[#allocation2 + $0x50] sm:$0xff] %vm492_vm4, %v857_v3  ;;  %v1159_v7 = vadd.f32 %v3969_v16, %v1131_v60  ;;  %v1129_v10 = vld [vmem:[#allocation2 + $0x20] sm:$0xff]  ;;  %v858_v14 = vadd.f32 %v3944_v55, %v830_v18  ;;  %v743_v15 = vpop.f32.mrb[23].mxu1  ;;  %v841_v55 = vld [vmem:[#allocation2 + $0xb0] sm:$0xff] }
 0x114   : > { %883 = vst.msk [vmem:[#allocation2 + $0x40] sm:$0xff] %vm492_vm4, %v855_v2  ;;  %v1157_v11 = vadd.f32 %v1129_v10, %v1030_v53  ;;  %v1132_v19 = vld [vmem:[#allocation2 + $0x38] sm:$0xff]  ;;  %v856_v20 = vadd.f32 %v828_v17, %v743_v15  ;;  %v839_v10 = vld [vmem:[#allocation2 + $0xa0] sm:$0xff] }
 0x115   : > { %1187 = vst.msk [vmem:[#allocation2 + $0x30] sm:$0xff] %vm492_vm4, %v1159_v7  ;;  %886 = vst.msk [vmem:[#allocation2 + $0x58] sm:$0xff] %vm492_vm4, %v858_v14  ;;  %v1160_v27 = vadd.f32 %v3970_v21, %v1132_v19  ;;  %v1130_v47 = vld [vmem:[#allocation2 + $0x28] sm:$0xff]  ;;  %v842_v19 = vld [vmem:[#allocation2 + $0xb8] sm:$0xff] }
 0x116   : > { %1185 = vst.msk [vmem:[#allocation2 + $0x20] sm:$0xff] %vm492_vm4, %v1157_v11  ;;  %884 = vst.msk [vmem:[#allocation2 + $0x48] sm:$0xff] %vm492_vm4, %v856_v20  ;;  %v1158_v13 = vadd.f32 %v1130_v47, %v1033_v58 }
 0x117   : > { %1188 = vst.msk [vmem:[#allocation2 + $0x38] sm:$0xff] %vm492_vm4, %v1160_v27  ;;  %v3973_v29 = vpop.f32.mrb[24].mxu0 }
 0x118   : > { %1186 = vst.msk [vmem:[#allocation2 + $0x28] sm:$0xff] %vm492_vm4, %v1158_v13  ;;  %v3947_v62 = vpop.f32.mrb[24].mxu1  ;;  %v1046_v22 = vpop.f32.mrb[25].mxu0 }
 0x119   : > { %v861_v31 = vadd.f32 %v3947_v62, %v833_v30  ;;  %v756_v26 = vpop.f32.mrb[25].mxu1  ;;  %v3974_v63 = vpop.f32.mrb[26].mxu0  ;;  %v840_v62 = vld [vmem:[#allocation2 + $0xa8] sm:$0xff] }
 0x11a   : > { %v1135_v33 = vld [vmem:[#allocation2 + $0x50] sm:$0xff]  ;;  %v859_v34 = vadd.f32 %v831_v32, %v756_v26  ;;  %v3948_v35 = vpop.f32.mrb[26].mxu1  ;;  %v1049_v37 = vpop.f32.mrb[27].mxu0 }
 0x11b   : > { %889 = vst.msk [vmem:[#allocation2 + $0x70] sm:$0xff] %vm492_vm4, %v861_v31  ;;  %v1163_v40 = vadd.f32 %v3973_v29, %v1135_v33  ;;  %v1133_v41 = vld [vmem:[#allocation2 + $0x40] sm:$0xff]  ;;  %v862_v59 = vadd.f32 %v3948_v35, %v834_v36  ;;  %v759_v43 = vpop.f32.mrb[27].mxu1  ;;  %v845_v35 = vld [vmem:[#allocation2 + $0xd0] sm:$0xff] }
 0x11c   : > { %887 = vst.msk [vmem:[#allocation2 + $0x60] sm:$0xff] %vm492_vm4, %v859_v34  ;;  %v1161_v44 = vadd.f32 %v1133_v41, %v1046_v22  ;;  %v1136_v5 = vld [vmem:[#allocation2 + $0x58] sm:$0xff]  ;;  %v860_v45 = vadd.f32 %v832_v0, %v759_v43  ;;  %v843_v41 = vld [vmem:[#allocation2 + $0xc0] sm:$0xff] }
 0x11d   : > { %1191 = vst.msk [vmem:[#allocation2 + $0x50] sm:$0xff] %vm492_vm4, %v1163_v40  ;;  %890 = vst.msk [vmem:[#allocation2 + $0x78] sm:$0xff] %vm492_vm4, %v862_v59  ;;  %v1164_v46 = vadd.f32 %v3974_v63, %v1136_v5  ;;  %v1134_v9 = vld [vmem:[#allocation2 + $0x48] sm:$0xff]  ;;  %v846_v5 = vld [vmem:[#allocation2 + $0xd8] sm:$0xff] }
 0x11e   : > { %1189 = vst.msk [vmem:[#allocation2 + $0x40] sm:$0xff] %vm492_vm4, %v1161_v44  ;;  %888 = vst.msk [vmem:[#allocation2 + $0x68] sm:$0xff] %vm492_vm4, %v860_v45  ;;  %v1162_v1 = vadd.f32 %v1134_v9, %v1049_v37 }
 0x11f   : > { %1192 = vst.msk [vmem:[#allocation2 + $0x58] sm:$0xff] %vm492_vm4, %v1164_v46  ;;  %v3977_v48 = vpop.f32.mrb[28].mxu0 }
 0x120   : > { %1190 = vst.msk [vmem:[#allocation2 + $0x48] sm:$0xff] %vm492_vm4, %v1162_v1  ;;  %v3951_v6 = vpop.f32.mrb[28].mxu1  ;;  %v1062_v12 = vpop.f32.mrb[29].mxu0 }
 0x121   : > { %v865_v50 = vadd.f32 %v3951_v6, %v837_v8  ;;  %v772_v24 = vpop.f32.mrb[29].mxu1  ;;  %v3978_v54 = vpop.f32.mrb[30].mxu0  ;;  %v844_v6 = vld [vmem:[#allocation2 + $0xc8] sm:$0xff] }
 0x122   : > { %v1139_v23 = vld [vmem:[#allocation2 + $0x70] sm:$0xff]  ;;  %v863_v28 = vadd.f32 %v835_v51, %v772_v24  ;;  %v3952_v52 = vpop.f32.mrb[30].mxu1  ;;  %v1065_v39 = vpop.f32.mrb[31].mxu0 }
 0x123   : > { %893 = vst.msk [vmem:[#allocation2 + $0x90] sm:$0xff] %vm492_vm4, %v865_v50  ;;  %v1167_v57 = vadd.f32 %v3977_v48, %v1139_v23  ;;  %v1137_v38 = vld [vmem:[#allocation2 + $0x60] sm:$0xff]  ;;  %v866_v42 = vadd.f32 %v3952_v52, %v838_v56  ;;  %v775_v16 = vpop.f32.mrb[31].mxu1  ;;  %v1507_v52 = vld [vmem:[#allocation2 + $0x10] sm:$0xff] }
 0x124   : > { %891 = vst.msk [vmem:[#allocation2 + $0x80] sm:$0xff] %vm492_vm4, %v863_v28  ;;  %v1165_v49 = vadd.f32 %v1137_v38, %v1062_v12  ;;  %v1140_v53 = vld [vmem:[#allocation2 + $0x78] sm:$0xff]  ;;  %v864_v3 = vadd.f32 %v836_v61, %v775_v16  ;;  %v1505_v38 = vld [vmem:[#allocation2] sm:$0xff] }
 0x125   : > { %1195 = vst.msk [vmem:[#allocation2 + $0x70] sm:$0xff] %vm492_vm4, %v1167_v57  ;;  %894 = vst.msk [vmem:[#allocation2 + $0x98] sm:$0xff] %vm492_vm4, %v866_v42  ;;  %v1168_v25 = vadd.f32 %v3978_v54, %v1140_v53  ;;  %v1138_v4 = vld [vmem:[#allocation2 + $0x68] sm:$0xff]  ;;  %v1508_v53 = vld [vmem:[#allocation2 + $0x18] sm:$0xff] }
 0x126   : > { %1193 = vst.msk [vmem:[#allocation2 + $0x60] sm:$0xff] %vm492_vm4, %v1165_v49  ;;  %892 = vst.msk [vmem:[#allocation2 + $0x88] sm:$0xff] %vm492_vm4, %v864_v3  ;;  %v1166_v21 = vadd.f32 %v1138_v4, %v1065_v39 }
 0x127   : > { %1196 = vst.msk [vmem:[#allocation2 + $0x78] sm:$0xff] %vm492_vm4, %v1168_v25  ;;  %v3981_v60 = vpop.f32.mrb[32].mxu0 }
 0x128   : > { %1194 = vst.msk [vmem:[#allocation2 + $0x68] sm:$0xff] %vm492_vm4, %v1166_v21  ;;  %v3955_v2 = vpop.f32.mrb[32].mxu1  ;;  %v1078_v18 = vpop.f32.mrb[33].mxu0 }
 0x129   : > { %v869_v58 = vadd.f32 %v3955_v2, %v841_v55  ;;  %v788_v7 = vpop.f32.mrb[33].mxu1  ;;  %v3982_v14 = vpop.f32.mrb[34].mxu0  ;;  %v1506_v2 = vld [vmem:[#allocation2 + $0x8] sm:$0xff] }
 0x12a   : > { %v1143_v15 = vld [vmem:[#allocation2 + $0x90] sm:$0xff]  ;;  %v867_v17 = vadd.f32 %v839_v10, %v788_v7  ;;  %v3956_v11 = vpop.f32.mrb[34].mxu1  ;;  %v1081_v20 = vpop.f32.mrb[35].mxu0 }
 0x12b   : > { %897 = vst.msk [vmem:[#allocation2 + $0xb0] sm:$0xff] %vm492_vm4, %v869_v58  ;;  %v1171_v27 = vadd.f32 %v3981_v60, %v1143_v15  ;;  %v1141_v47 = vld [vmem:[#allocation2 + $0x80] sm:$0xff]  ;;  %v870_v13 = vadd.f32 %v3956_v11, %v842_v19  ;;  %v791_v29 = vpop.f32.mrb[35].mxu1  ;;  %v1511_v11 = vld [vmem:[#allocation2 + $0x30] sm:$0xff] }
 0x12c   : > { %895 = vst.msk [vmem:[#allocation2 + $0xa0] sm:$0xff] %vm492_vm4, %v867_v17  ;;  %v1169_v30 = vadd.f32 %v1141_v47, %v1078_v18  ;;  %v1144_v22 = vld [vmem:[#allocation2 + $0x98] sm:$0xff]  ;;  %v868_v31 = vadd.f32 %v840_v62, %v791_v29  ;;  %v1509_v47 = vld [vmem:[#allocation2 + $0x20] sm:$0xff] }
 0x12d   : > { %1199 = vst.msk [vmem:[#allocation2 + $0x90] sm:$0xff] %vm492_vm4, %v1171_v27  ;;  %898 = vst.msk [vmem:[#allocation2 + $0xb8] sm:$0xff] %vm492_vm4, %v870_v13  ;;  %v1172_v26 = vadd.f32 %v3982_v14, %v1144_v22  ;;  %v1142_v32 = vld [vmem:[#allocation2 + $0x88] sm:$0xff]  ;;  %v1512_v22 = vld [vmem:[#allocation2 + $0x38] sm:$0xff] }
 0x12e   : > { %1197 = vst.msk [vmem:[#allocation2 + $0x80] sm:$0xff] %vm492_vm4, %v1169_v30  ;;  %896 = vst.msk [vmem:[#allocation2 + $0xa8] sm:$0xff] %vm492_vm4, %v868_v31  ;;  %v1170_v63 = vadd.f32 %v1142_v32, %v1081_v20 }
 0x12f   : > { %1200 = vst.msk [vmem:[#allocation2 + $0x98] sm:$0xff] %vm492_vm4, %v1172_v26  ;;  %v3985_v33 = vpop.f32.mrb[36].mxu0 }
 0x130   : > { %1198 = vst.msk [vmem:[#allocation2 + $0x88] sm:$0xff] %vm492_vm4, %v1170_v63  ;;  %v3959_v34 = vpop.f32.mrb[36].mxu1  ;;  %v1094_v36 = vpop.f32.mrb[37].mxu0 }
 0x131   : > { %v873_v37 = vadd.f32 %v3959_v34, %v845_v35  ;;  %v804_v40 = vpop.f32.mrb[37].mxu1  ;;  %v3986_v59 = vpop.f32.mrb[38].mxu0  ;;  %v1510_v34 = vld [vmem:[#allocation2 + $0x28] sm:$0xff] }
 0x132   : > { %v1147_v43 = vld [vmem:[#allocation2 + $0xb0] sm:$0xff]  ;;  %v871_v0 = vadd.f32 %v843_v41, %v804_v40  ;;  %v3960_v44 = vpop.f32.mrb[38].mxu1  ;;  %v1097_v45 = vpop.f32.mrb[39].mxu0 }
 0x133   : > { %901 = vst.msk [vmem:[#allocation2 + $0xd0] sm:$0xff] %vm492_vm4, %v873_v37  ;;  %v1175_v46 = vadd.f32 %v3985_v33, %v1147_v43  ;;  %v1145_v9 = vld [vmem:[#allocation2 + $0xa0] sm:$0xff]  ;;  %v874_v1 = vadd.f32 %v3960_v44, %v846_v5  ;;  %v807_v48 = vpop.f32.mrb[39].mxu1  ;;  %v1515_v44 = vld [vmem:[#allocation2 + $0x50] sm:$0xff] }
 0x134   : > { %899 = vst.msk [vmem:[#allocation2 + $0xc0] sm:$0xff] %vm492_vm4, %v871_v0  ;;  %v1173_v8 = vadd.f32 %v1145_v9, %v1094_v36  ;;  %v1148_v12 = vld [vmem:[#allocation2 + $0xb8] sm:$0xff]  ;;  %v872_v50 = vadd.f32 %v844_v6, %v807_v48  ;;  %v1513_v9 = vld [vmem:[#allocation2 + $0x40] sm:$0xff] }
 0x135   : > { %1203 = vst.msk [vmem:[#allocation2 + $0xb0] sm:$0xff] %vm492_vm4, %v1175_v46  ;;  %902 = vst.msk [vmem:[#allocation2 + $0xd8] sm:$0xff] %vm492_vm4, %v874_v1  ;;  %v1176_v24 = vadd.f32 %v3986_v59, %v1148_v12  ;;  %v1146_v51 = vld [vmem:[#allocation2 + $0xa8] sm:$0xff]  ;;  %v1516_v12 = vld [vmem:[#allocation2 + $0x58] sm:$0xff] }
 0x136   : > { %1201 = vst.msk [vmem:[#allocation2 + $0xa0] sm:$0xff] %vm492_vm4, %v1173_v8  ;;  %900 = vst.msk [vmem:[#allocation2 + $0xc8] sm:$0xff] %vm492_vm4, %v872_v50  ;;  %v1174_v54 = vadd.f32 %v1146_v51, %v1097_v45 }
 0x137   : > { %1204 = vst.msk [vmem:[#allocation2 + $0xb8] sm:$0xff] %vm492_vm4, %v1176_v24  ;;  %v3989_v23 = vpop.f32.mrb[40].mxu0 }
 0x138   : > { %1202 = vst.msk [vmem:[#allocation2 + $0xa8] sm:$0xff] %vm492_vm4, %v1174_v54  ;;  %v3995_v28 = vpop.f32.mrb[40].mxu1  ;;  %v1110_v56 = vpop.f32.mrb[41].mxu0 }
 0x139   : > { %v1535_v39 = vadd.f32 %v3995_v28, %v1507_v52  ;;  %v1394_v57 = vpop.f32.mrb[41].mxu1  ;;  %v3990_v42 = vpop.f32.mrb[42].mxu0  ;;  %v1514_v28 = vld [vmem:[#allocation2 + $0x48] sm:$0xff] }
 0x13a   : > { %v1151_v16 = vld [vmem:[#allocation2 + $0xd0] sm:$0xff]  ;;  %v1533_v61 = vadd.f32 %v1505_v38, %v1394_v57  ;;  %v3996_v49 = vpop.f32.mrb[42].mxu1  ;;  %v1113_v3 = vpop.f32.mrb[43].mxu0 }
 0x13b   : > { %v1179_v25 = vadd.f32 %v3989_v23, %v1151_v16  ;;  %1563 = vst.msk [vmem:[#allocation2 + $0x10] sm:$0xff] %vm492_vm4, %v1535_v39  ;;  %v1149_v4 = vld [vmem:[#allocation2 + $0xc0] sm:$0xff]  ;;  %v1536_v21 = vadd.f32 %v3996_v49, %v1508_v53  ;;  %v1397_v60 = vpop.f32.mrb[43].mxu1  ;;  %v1519_v49 = vld [vmem:[#allocation2 + $0x70] sm:$0xff] }
 0x13c   : > { %v1177_v55 = vadd.f32 %v1149_v4, %v1110_v56  ;;  %1561 = vst.msk [vmem:[#allocation2] sm:$0xff] %vm492_vm4, %v1533_v61  ;;  %v1152_v18 = vld [vmem:[#allocation2 + $0xd8] sm:$0xff]  ;;  %v1534_v58 = vadd.f32 %v1506_v2, %v1397_v60  ;;  %v1517_v4 = vld [vmem:[#allocation2 + $0x60] sm:$0xff] }
 0x13d   : > { %1207 = vst.msk [vmem:[#allocation2 + $0xd0] sm:$0xff] %vm492_vm4, %v1179_v25  ;;  %v1180_v7 = vadd.f32 %v3990_v42, %v1152_v18  ;;  %1564 = vst.msk [vmem:[#allocation2 + $0x18] sm:$0xff] %vm492_vm4, %v1536_v21  ;;  %v1150_v10 = vld [vmem:[#allocation2 + $0xc8] sm:$0xff]  ;;  %v1520_v18 = vld [vmem:[#allocation2 + $0x78] sm:$0xff] }
 0x13e   : > { %1205 = vst.msk [vmem:[#allocation2 + $0xc0] sm:$0xff] %vm492_vm4, %v1177_v55  ;;  %v1178_v14 = vadd.f32 %v1150_v10, %v1113_v3  ;;  %1562 = vst.msk [vmem:[#allocation2 + $0x8] sm:$0xff] %vm492_vm4, %v1534_v58 }
 0x13f   : > { %1208 = vst.msk [vmem:[#allocation2 + $0xd8] sm:$0xff] %vm492_vm4, %v1180_v7  ;;  %v4025_v15 = vpop.f32.mrb[44].mxu0 }
 0x140   : > { %1206 = vst.msk [vmem:[#allocation2 + $0xc8] sm:$0xff] %vm492_vm4, %v1178_v14  ;;  %v3999_v17 = vpop.f32.mrb[44].mxu1  ;;  %v1775_v19 = vpop.f32.mrb[45].mxu0 }
 0x141   : > { %v1539_v20 = vadd.f32 %v3999_v17, %v1511_v11  ;;  %v1410_v27 = vpop.f32.mrb[45].mxu1  ;;  %v4026_v13 = vpop.f32.mrb[46].mxu0  ;;  %v1518_v17 = vld [vmem:[#allocation2 + $0x68] sm:$0xff] }
 0x142   : > { %v1888_v29 = vld [vmem:[#allocation2 + $0x10] sm:$0xff]  ;;  %v1537_v62 = vadd.f32 %v1509_v47, %v1410_v27  ;;  %v4000_v30 = vpop.f32.mrb[46].mxu1  ;;  %v1778_v31 = vpop.f32.mrb[47].mxu0 }
 0x143   : > { %1567 = vst.msk [vmem:[#allocation2 + $0x30] sm:$0xff] %vm492_vm4, %v1539_v20  ;;  %v1916_v26 = vadd.f32 %v4025_v15, %v1888_v29  ;;  %v1886_v32 = vld [vmem:[#allocation2] sm:$0xff]  ;;  %v1540_v63 = vadd.f32 %v4000_v30, %v1512_v22  ;;  %v1413_v33 = vpop.f32.mrb[47].mxu1  ;;  %v1523_v30 = vld [vmem:[#allocation2 + $0x90] sm:$0xff] }
 0x144   : > { %1565 = vst.msk [vmem:[#allocation2 + $0x20] sm:$0xff] %vm492_vm4, %v1537_v62  ;;  %v1914_v35 = vadd.f32 %v1886_v32, %v1775_v19  ;;  %v1889_v36 = vld [vmem:[#allocation2 + $0x18] sm:$0xff]  ;;  %v1538_v37 = vadd.f32 %v1510_v34, %v1413_v33  ;;  %v1521_v32 = vld [vmem:[#allocation2 + $0x80] sm:$0xff] }
 0x145   : > { %1944 = vst.msk [vmem:[#allocation2 + $0x10] sm:$0xff] %vm492_vm4, %v1916_v26  ;;  %1568 = vst.msk [vmem:[#allocation2 + $0x38] sm:$0xff] %vm492_vm4, %v1540_v63  ;;  %v1917_v40 = vadd.f32 %v4026_v13, %v1889_v36  ;;  %v1887_v41 = vld [vmem:[#allocation2 + $0x8] sm:$0xff]  ;;  %v1524_v36 = vld [vmem:[#allocation2 + $0x98] sm:$0xff] }
 0x146   : > { %1942 = vst.msk [vmem:[#allocation2] sm:$0xff] %vm492_vm4, %v1914_v35  ;;  %1566 = vst.msk [vmem:[#allocation2 + $0x28] sm:$0xff] %vm492_vm4, %v1538_v37  ;;  %v1915_v59 = vadd.f32 %v1887_v41, %v1778_v31 }
 0x147   : > { %1945 = vst.msk [vmem:[#allocation2 + $0x18] sm:$0xff] %vm492_vm4, %v1917_v40  ;;  %v4029_v43 = vpop.f32.mrb[48].mxu0 }
 0x148   : > { %1943 = vst.msk [vmem:[#allocation2 + $0x8] sm:$0xff] %vm492_vm4, %v1915_v59  ;;  %v4003_v0 = vpop.f32.mrb[48].mxu1  ;;  %v1791_v5 = vpop.f32.mrb[49].mxu0 }
 0x149   : > { %v1543_v45 = vadd.f32 %v4003_v0, %v1515_v44  ;;  %v1426_v46 = vpop.f32.mrb[49].mxu1  ;;  %v4030_v1 = vpop.f32.mrb[50].mxu0  ;;  %v1522_v0 = vld [vmem:[#allocation2 + $0x88] sm:$0xff] }
 0x14a   : > { %v1892_v48 = vld [vmem:[#allocation2 + $0x30] sm:$0xff]  ;;  %v1541_v6 = vadd.f32 %v1513_v9, %v1426_v46  ;;  %v4004_v8 = vpop.f32.mrb[50].mxu1  ;;  %v1794_v50 = vpop.f32.mrb[51].mxu0 }
 0x14b   : > { %1571 = vst.msk [vmem:[#allocation2 + $0x50] sm:$0xff] %vm492_vm4, %v1543_v45  ;;  %v1920_v24 = vadd.f32 %v4029_v43, %v1892_v48  ;;  %v1890_v51 = vld [vmem:[#allocation2 + $0x20] sm:$0xff]  ;;  %v1544_v54 = vadd.f32 %v4004_v8, %v1516_v12  ;;  %v1429_v23 = vpop.f32.mrb[51].mxu1  ;;  %v1527_v8 = vld [vmem:[#allocation2 + $0xb0] sm:$0xff] }
 0x14c   : > { %1569 = vst.msk [vmem:[#allocation2 + $0x40] sm:$0xff] %vm492_vm4, %v1541_v6  ;;  %v1918_v52 = vadd.f32 %v1890_v51, %v1791_v5  ;;  %v1893_v56 = vld [vmem:[#allocation2 + $0x38] sm:$0xff]  ;;  %v1542_v39 = vadd.f32 %v1514_v28, %v1429_v23  ;;  %v1525_v51 = vld [vmem:[#allocation2 + $0xa0] sm:$0xff] }
 0x14d   : > { %1948 = vst.msk [vmem:[#allocation2 + $0x30] sm:$0xff] %vm492_vm4, %v1920_v24  ;;  %1572 = vst.msk [vmem:[#allocation2 + $0x58] sm:$0xff] %vm492_vm4, %v1544_v54  ;;  %v1921_v57 = vadd.f32 %v4030_v1, %v1893_v56  ;;  %v1891_v38 = vld [vmem:[#allocation2 + $0x28] sm:$0xff]  ;;  %v1528_v56 = vld [vmem:[#allocation2 + $0xb8] sm:$0xff] }
 0x14e   : > { %1946 = vst.msk [vmem:[#allocation2 + $0x20] sm:$0xff] %vm492_vm4, %v1918_v52  ;;  %1570 = vst.msk [vmem:[#allocation2 + $0x48] sm:$0xff] %vm492_vm4, %v1542_v39  ;;  %v1919_v42 = vadd.f32 %v1891_v38, %v1794_v50 }
 0x14f   : > { %1949 = vst.msk [vmem:[#allocation2 + $0x38] sm:$0xff] %vm492_vm4, %v1921_v57  ;;  %v4033_v16 = vpop.f32.mrb[52].mxu0 }
 0x150   : > { %1947 = vst.msk [vmem:[#allocation2 + $0x28] sm:$0xff] %vm492_vm4, %v1919_v42  ;;  %v4007_v61 = vpop.f32.mrb[52].mxu1  ;;  %v1807_v53 = vpop.f32.mrb[53].mxu0 }
 0x151   : > { %v1547_v3 = vadd.f32 %v4007_v61, %v1519_v49  ;;  %v1442_v25 = vpop.f32.mrb[53].mxu1  ;;  %v4034_v21 = vpop.f32.mrb[54].mxu0  ;;  %v1526_v61 = vld [vmem:[#allocation2 + $0xa8] sm:$0xff] }
 0x152   : > { %v1896_v60 = vld [vmem:[#allocation2 + $0x50] sm:$0xff]  ;;  %v1545_v2 = vadd.f32 %v1517_v4, %v1442_v25  ;;  %v4008_v55 = vpop.f32.mrb[54].mxu1  ;;  %v1810_v58 = vpop.f32.mrb[55].mxu0 }
 0x153   : > { %1575 = vst.msk [vmem:[#allocation2 + $0x70] sm:$0xff] %vm492_vm4, %v1547_v3  ;;  %v1924_v7 = vadd.f32 %v4033_v16, %v1896_v60  ;;  %v1894_v10 = vld [vmem:[#allocation2 + $0x40] sm:$0xff]  ;;  %v1548_v14 = vadd.f32 %v4008_v55, %v1520_v18  ;;  %v1445_v15 = vpop.f32.mrb[55].mxu1  ;;  %v1531_v55 = vld [vmem:[#allocation2 + $0xd0] sm:$0xff] }
 0x154   : > { %1573 = vst.msk [vmem:[#allocation2 + $0x60] sm:$0xff] %vm492_vm4, %v1545_v2  ;;  %v1922_v11 = vadd.f32 %v1894_v10, %v1807_v53  ;;  %v1897_v19 = vld [vmem:[#allocation2 + $0x58] sm:$0xff]  ;;  %v1546_v20 = vadd.f32 %v1518_v17, %v1445_v15  ;;  %v1529_v10 = vld [vmem:[#allocation2 + $0xc0] sm:$0xff] }
 0x155   : > { %1952 = vst.msk [vmem:[#allocation2 + $0x50] sm:$0xff] %vm492_vm4, %v1924_v7  ;;  %1576 = vst.msk [vmem:[#allocation2 + $0x78] sm:$0xff] %vm492_vm4, %v1548_v14  ;;  %v1925_v27 = vadd.f32 %v4034_v21, %v1897_v19  ;;  %v1895_v47 = vld [vmem:[#allocation2 + $0x48] sm:$0xff]  ;;  %v1532_v19 = vld [vmem:[#allocation2 + $0xd8] sm:$0xff] }
 0x156   : > { %1950 = vst.msk [vmem:[#allocation2 + $0x40] sm:$0xff] %vm492_vm4, %v1922_v11  ;;  %1574 = vst.msk [vmem:[#allocation2 + $0x68] sm:$0xff] %vm492_vm4, %v1546_v20  ;;  %v1923_v13 = vadd.f32 %v1895_v47, %v1810_v58 }
 0x157   : > { %1953 = vst.msk [vmem:[#allocation2 + $0x58] sm:$0xff] %vm492_vm4, %v1925_v27  ;;  %v4037_v29 = vpop.f32.mrb[56].mxu0 }
 0x158   : > { %1951 = vst.msk [vmem:[#allocation2 + $0x48] sm:$0xff] %vm492_vm4, %v1923_v13  ;;  %v4011_v62 = vpop.f32.mrb[56].mxu1  ;;  %v1823_v22 = vpop.f32.mrb[57].mxu0 }
 0x159   : > { %v1551_v31 = vadd.f32 %v4011_v62, %v1523_v30  ;;  %v1458_v26 = vpop.f32.mrb[57].mxu1  ;;  %v4038_v63 = vpop.f32.mrb[58].mxu0  ;;  %v1530_v62 = vld [vmem:[#allocation2 + $0xc8] sm:$0xff] }
 0x15a   : > { %v1900_v33 = vld [vmem:[#allocation2 + $0x70] sm:$0xff]  ;;  %v1549_v34 = vadd.f32 %v1521_v32, %v1458_v26  ;;  %v4012_v35 = vpop.f32.mrb[58].mxu1  ;;  %v1826_v37 = vpop.f32.mrb[59].mxu0 }
 0x15b   : > { %1579 = vst.msk [vmem:[#allocation2 + $0x90] sm:$0xff] %vm492_vm4, %v1551_v31  ;;  %v1928_v40 = vadd.f32 %v4037_v29, %v1900_v33  ;;  %v1898_v41 = vld [vmem:[#allocation2 + $0x60] sm:$0xff]  ;;  %v1552_v59 = vadd.f32 %v4012_v35, %v1524_v36  ;;  %v1461_v43 = vpop.f32.mrb[59].mxu1  ;;  %v2193_v35 = vld [vmem:[#allocation2 + $0x10] sm:$0xff] }
 0x15c   : > { %1577 = vst.msk [vmem:[#allocation2 + $0x80] sm:$0xff] %vm492_vm4, %v1549_v34  ;;  %v1926_v44 = vadd.f32 %v1898_v41, %v1823_v22  ;;  %v1901_v5 = vld [vmem:[#allocation2 + $0x78] sm:$0xff]  ;;  %v1550_v45 = vadd.f32 %v1522_v0, %v1461_v43  ;;  %v2191_v41 = vld [vmem:[#allocation2] sm:$0xff] }
 0x15d   : > { %1956 = vst.msk [vmem:[#allocation2 + $0x70] sm:$0xff] %vm492_vm4, %v1928_v40  ;;  %1580 = vst.msk [vmem:[#allocation2 + $0x98] sm:$0xff] %vm492_vm4, %v1552_v59  ;;  %v1929_v46 = vadd.f32 %v4038_v63, %v1901_v5  ;;  %v1899_v9 = vld [vmem:[#allocation2 + $0x68] sm:$0xff]  ;;  %v2194_v5 = vld [vmem:[#allocation2 + $0x18] sm:$0xff] }
 0x15e   : > { %1954 = vst.msk [vmem:[#allocation2 + $0x60] sm:$0xff] %vm492_vm4, %v1926_v44  ;;  %1578 = vst.msk [vmem:[#allocation2 + $0x88] sm:$0xff] %vm492_vm4, %v1550_v45  ;;  %v1927_v1 = vadd.f32 %v1899_v9, %v1826_v37 }
 0x15f   : > { %1957 = vst.msk [vmem:[#allocation2 + $0x78] sm:$0xff] %vm492_vm4, %v1929_v46  ;;  %v4041_v48 = vpop.f32.mrb[60].mxu0 }
 0x160   : > { %1955 = vst.msk [vmem:[#allocation2 + $0x68] sm:$0xff] %vm492_vm4, %v1927_v1  ;;  %v4015_v6 = vpop.f32.mrb[60].mxu1  ;;  %v1839_v12 = vpop.f32.mrb[61].mxu0 }
 0x161   : > { %v1555_v50 = vadd.f32 %v4015_v6, %v1527_v8  ;;  %v1474_v24 = vpop.f32.mrb[61].mxu1  ;;  %v4042_v54 = vpop.f32.mrb[62].mxu0  ;;  %v2192_v6 = vld [vmem:[#allocation2 + $0x8] sm:$0xff] }
 0x162   : > { %v1904_v23 = vld [vmem:[#allocation2 + $0x90] sm:$0xff]  ;;  %v1553_v28 = vadd.f32 %v1525_v51, %v1474_v24  ;;  %v4016_v52 = vpop.f32.mrb[62].mxu1  ;;  %v1842_v39 = vpop.f32.mrb[63].mxu0 }
 0x163   : > { %1583 = vst.msk [vmem:[#allocation2 + $0xb0] sm:$0xff] %vm492_vm4, %v1555_v50  ;;  %v1932_v57 = vadd.f32 %v4041_v48, %v1904_v23  ;;  %v1902_v38 = vld [vmem:[#allocation2 + $0x80] sm:$0xff]  ;;  %v1556_v42 = vadd.f32 %v4016_v52, %v1528_v56  ;;  %v1477_v16 = vpop.f32.mrb[63].mxu1  ;;  %v2197_v52 = vld [vmem:[#allocation2 + $0x30] sm:$0xff] }
 0x164   : > { %1581 = vst.msk [vmem:[#allocation2 + $0xa0] sm:$0xff] %vm492_vm4, %v1553_v28  ;;  %v1930_v49 = vadd.f32 %v1902_v38, %v1839_v12  ;;  %v1905_v53 = vld [vmem:[#allocation2 + $0x98] sm:$0xff]  ;;  %v1554_v3 = vadd.f32 %v1526_v61, %v1477_v16  ;;  %v2195_v38 = vld [vmem:[#allocation2 + $0x20] sm:$0xff] }
 0x165   : > { %1960 = vst.msk [vmem:[#allocation2 + $0x90] sm:$0xff] %vm492_vm4, %v1932_v57  ;;  %1584 = vst.msk [vmem:[#allocation2 + $0xb8] sm:$0xff] %vm492_vm4, %v1556_v42  ;;  %v1933_v25 = vadd.f32 %v4042_v54, %v1905_v53  ;;  %v1903_v4 = vld [vmem:[#allocation2 + $0x88] sm:$0xff]  ;;  %v2198_v53 = vld [vmem:[#allocation2 + $0x38] sm:$0xff] }
 0x166   : > { %1958 = vst.msk [vmem:[#allocation2 + $0x80] sm:$0xff] %vm492_vm4, %v1930_v49  ;;  %1582 = vst.msk [vmem:[#allocation2 + $0xa8] sm:$0xff] %vm492_vm4, %v1554_v3  ;;  %v1931_v21 = vadd.f32 %v1903_v4, %v1842_v39 }
 0x167   : > { %1961 = vst.msk [vmem:[#allocation2 + $0x98] sm:$0xff] %vm492_vm4, %v1933_v25  ;;  %v4045_v60 = vpop.f32.mrb[64].mxu0 }
 0x168   : > { %1959 = vst.msk [vmem:[#allocation2 + $0x88] sm:$0xff] %vm492_vm4, %v1931_v21  ;;  %v4019_v2 = vpop.f32.mrb[64].mxu1  ;;  %v1855_v18 = vpop.f32.mrb[65].mxu0 }
 0x169   : > { %v1559_v58 = vadd.f32 %v4019_v2, %v1531_v55  ;;  %v1490_v7 = vpop.f32.mrb[65].mxu1  ;;  %v4046_v14 = vpop.f32.mrb[66].mxu0  ;;  %v2196_v2 = vld [vmem:[#allocation2 + $0x28] sm:$0xff] }
 0x16a   : > { %v1908_v15 = vld [vmem:[#allocation2 + $0xb0] sm:$0xff]  ;;  %v1557_v17 = vadd.f32 %v1529_v10, %v1490_v7  ;;  %v4020_v11 = vpop.f32.mrb[66].mxu1  ;;  %v1858_v20 = vpop.f32.mrb[67].mxu0 }
 0x16b   : > { %1587 = vst.msk [vmem:[#allocation2 + $0xd0] sm:$0xff] %vm492_vm4, %v1559_v58  ;;  %v1936_v27 = vadd.f32 %v4045_v60, %v1908_v15  ;;  %v1906_v47 = vld [vmem:[#allocation2 + $0xa0] sm:$0xff]  ;;  %v1560_v13 = vadd.f32 %v4020_v11, %v1532_v19  ;;  %v1493_v29 = vpop.f32.mrb[67].mxu1  ;;  %v2201_v11 = vld [vmem:[#allocation2 + $0x50] sm:$0xff] }
 0x16c   : > { %1585 = vst.msk [vmem:[#allocation2 + $0xc0] sm:$0xff] %vm492_vm4, %v1557_v17  ;;  %v1934_v30 = vadd.f32 %v1906_v47, %v1855_v18  ;;  %v1909_v22 = vld [vmem:[#allocation2 + $0xb8] sm:$0xff]  ;;  %v1558_v31 = vadd.f32 %v1530_v62, %v1493_v29  ;;  %v2199_v47 = vld [vmem:[#allocation2 + $0x40] sm:$0xff] }
 0x16d   : > { %1964 = vst.msk [vmem:[#allocation2 + $0xb0] sm:$0xff] %vm492_vm4, %v1936_v27  ;;  %1588 = vst.msk [vmem:[#allocation2 + $0xd8] sm:$0xff] %vm492_vm4, %v1560_v13  ;;  %v1937_v26 = vadd.f32 %v4046_v14, %v1909_v22  ;;  %v1907_v32 = vld [vmem:[#allocation2 + $0xa8] sm:$0xff]  ;;  %v2202_v22 = vld [vmem:[#allocation2 + $0x58] sm:$0xff] }
 0x16e   : > { %1962 = vst.msk [vmem:[#allocation2 + $0xa0] sm:$0xff] %vm492_vm4, %v1934_v30  ;;  %1586 = vst.msk [vmem:[#allocation2 + $0xc8] sm:$0xff] %vm492_vm4, %v1558_v31  ;;  %v1935_v63 = vadd.f32 %v1907_v32, %v1858_v20 }
 0x16f   : > { %1965 = vst.msk [vmem:[#allocation2 + $0xb8] sm:$0xff] %vm492_vm4, %v1937_v26  ;;  %v4049_v33 = vpop.f32.mrb[68].mxu0 }
 0x170   : > { %1963 = vst.msk [vmem:[#allocation2 + $0xa8] sm:$0xff] %vm492_vm4, %v1935_v63  ;;  %v4055_v34 = vpop.f32.mrb[68].mxu1  ;;  %v1871_v36 = vpop.f32.mrb[69].mxu0 }
 0x171   : > { %v2221_v37 = vadd.f32 %v4055_v34, %v2193_v35  ;;  %v2080_v40 = vpop.f32.mrb[69].mxu1  ;;  %v4050_v59 = vpop.f32.mrb[70].mxu0  ;;  %v2200_v34 = vld [vmem:[#allocation2 + $0x48] sm:$0xff] }
 0x172   : > { %v1912_v43 = vld [vmem:[#allocation2 + $0xd0] sm:$0xff]  ;;  %v2219_v0 = vadd.f32 %v2191_v41, %v2080_v40  ;;  %v4056_v44 = vpop.f32.mrb[70].mxu1  ;;  %v1874_v45 = vpop.f32.mrb[71].mxu0 }
 0x173   : > { %v1940_v46 = vadd.f32 %v4049_v33, %v1912_v43  ;;  %2249 = vst.msk [vmem:[#allocation2 + $0x10] sm:$0xff] %vm492_vm4, %v2221_v37  ;;  %v1910_v9 = vld [vmem:[#allocation2 + $0xc0] sm:$0xff]  ;;  %v2222_v1 = vadd.f32 %v4056_v44, %v2194_v5  ;;  %v2083_v48 = vpop.f32.mrb[71].mxu1  ;;  %v2205_v44 = vld [vmem:[#allocation2 + $0x70] sm:$0xff] }
 0x174   : > { %v1938_v8 = vadd.f32 %v1910_v9, %v1871_v36  ;;  %2247 = vst.msk [vmem:[#allocation2] sm:$0xff] %vm492_vm4, %v2219_v0  ;;  %v1913_v12 = vld [vmem:[#allocation2 + $0xd8] sm:$0xff]  ;;  %v2220_v50 = vadd.f32 %v2192_v6, %v2083_v48  ;;  %v2203_v9 = vld [vmem:[#allocation2 + $0x60] sm:$0xff] }
 0x175   : > { %1968 = vst.msk [vmem:[#allocation2 + $0xd0] sm:$0xff] %vm492_vm4, %v1940_v46  ;;  %v1941_v24 = vadd.f32 %v4050_v59, %v1913_v12  ;;  %2250 = vst.msk [vmem:[#allocation2 + $0x18] sm:$0xff] %vm492_vm4, %v2222_v1  ;;  %v1911_v51 = vld [vmem:[#allocation2 + $0xc8] sm:$0xff]  ;;  %v2206_v12 = vld [vmem:[#allocation2 + $0x78] sm:$0xff] }
 0x176   : > { %1966 = vst.msk [vmem:[#allocation2 + $0xc0] sm:$0xff] %vm492_vm4, %v1938_v8  ;;  %v1939_v54 = vadd.f32 %v1911_v51, %v1874_v45  ;;  %2248 = vst.msk [vmem:[#allocation2 + $0x8] sm:$0xff] %vm492_vm4, %v2220_v50 }
 0x177   : > { %1969 = vst.msk [vmem:[#allocation2 + $0xd8] sm:$0xff] %vm492_vm4, %v1941_v24  ;;  %v4085_v23 = vpop.f32.mrb[72].mxu0 }
 0x178   : > { %1967 = vst.msk [vmem:[#allocation2 + $0xc8] sm:$0xff] %vm492_vm4, %v1939_v54  ;;  %v4059_v28 = vpop.f32.mrb[72].mxu1  ;;  %v2460_v56 = vpop.f32.mrb[73].mxu0 }
 0x179   : > { %v2225_v39 = vadd.f32 %v4059_v28, %v2197_v52  ;;  %v2096_v57 = vpop.f32.mrb[73].mxu1  ;;  %v4086_v42 = vpop.f32.mrb[74].mxu0  ;;  %v2204_v28 = vld [vmem:[#allocation2 + $0x68] sm:$0xff] }
 0x17a   : > { %v2573_v16 = vld [vmem:[#allocation2 + $0x10] sm:$0xff]  ;;  %v2223_v61 = vadd.f32 %v2195_v38, %v2096_v57  ;;  %v4060_v49 = vpop.f32.mrb[74].mxu1  ;;  %v2463_v3 = vpop.f32.mrb[75].mxu0 }
 0x17b   : > { %2253 = vst.msk [vmem:[#allocation2 + $0x30] sm:$0xff] %vm492_vm4, %v2225_v39  ;;  %v2601_v25 = vadd.f32 %v4085_v23, %v2573_v16  ;;  %v2571_v4 = vld [vmem:[#allocation2] sm:$0xff]  ;;  %v2226_v21 = vadd.f32 %v4060_v49, %v2198_v53  ;;  %v2099_v60 = vpop.f32.mrb[75].mxu1  ;;  %v2209_v49 = vld [vmem:[#allocation2 + $0x90] sm:$0xff] }
 0x17c   : > { %2251 = vst.msk [vmem:[#allocation2 + $0x20] sm:$0xff] %vm492_vm4, %v2223_v61  ;;  %v2599_v55 = vadd.f32 %v2571_v4, %v2460_v56  ;;  %v2574_v18 = vld [vmem:[#allocation2 + $0x18] sm:$0xff]  ;;  %v2224_v58 = vadd.f32 %v2196_v2, %v2099_v60  ;;  %v2207_v4 = vld [vmem:[#allocation2 + $0x80] sm:$0xff] }
 0x17d   : > { %2629 = vst.msk [vmem:[#allocation2 + $0x10] sm:$0xff] %vm492_vm4, %v2601_v25  ;;  %2254 = vst.msk [vmem:[#allocation2 + $0x38] sm:$0xff] %vm492_vm4, %v2226_v21  ;;  %v2602_v7 = vadd.f32 %v4086_v42, %v2574_v18  ;;  %v2572_v10 = vld [vmem:[#allocation2 + $0x8] sm:$0xff]  ;;  %v2210_v18 = vld [vmem:[#allocation2 + $0x98] sm:$0xff] }
 0x17e   : > { %2627 = vst.msk [vmem:[#allocation2] sm:$0xff] %vm492_vm4, %v2599_v55  ;;  %2252 = vst.msk [vmem:[#allocation2 + $0x28] sm:$0xff] %vm492_vm4, %v2224_v58  ;;  %v2600_v14 = vadd.f32 %v2572_v10, %v2463_v3 }
 0x17f   : > { %2630 = vst.msk [vmem:[#allocation2 + $0x18] sm:$0xff] %vm492_vm4, %v2602_v7  ;;  %v4089_v15 = vpop.f32.mrb[76].mxu0 }
 0x180   : > { %2628 = vst.msk [vmem:[#allocation2 + $0x8] sm:$0xff] %vm492_vm4, %v2600_v14  ;;  %v4063_v17 = vpop.f32.mrb[76].mxu1  ;;  %v2476_v19 = vpop.f32.mrb[77].mxu0 }
 0x181   : > { %v2229_v20 = vadd.f32 %v4063_v17, %v2201_v11  ;;  %v2112_v27 = vpop.f32.mrb[77].mxu1  ;;  %v4090_v13 = vpop.f32.mrb[78].mxu0  ;;  %v2208_v17 = vld [vmem:[#allocation2 + $0x88] sm:$0xff] }
 0x182   : > { %v2577_v29 = vld [vmem:[#allocation2 + $0x30] sm:$0xff]  ;;  %v2227_v62 = vadd.f32 %v2199_v47, %v2112_v27  ;;  %v4064_v30 = vpop.f32.mrb[78].mxu1  ;;  %v2479_v31 = vpop.f32.mrb[79].mxu0 }
 0x183   : > { %2257 = vst.msk [vmem:[#allocation2 + $0x50] sm:$0xff] %vm492_vm4, %v2229_v20  ;;  %v2605_v26 = vadd.f32 %v4089_v15, %v2577_v29  ;;  %v2575_v32 = vld [vmem:[#allocation2 + $0x20] sm:$0xff]  ;;  %v2230_v63 = vadd.f32 %v4064_v30, %v2202_v22  ;;  %v2115_v33 = vpop.f32.mrb[79].mxu1  ;;  %v2213_v30 = vld [vmem:[#allocation2 + $0xb0] sm:$0xff] }
 0x184   : > { %2255 = vst.msk [vmem:[#allocation2 + $0x40] sm:$0xff] %vm492_vm4, %v2227_v62  ;;  %v2603_v35 = vadd.f32 %v2575_v32, %v2476_v19  ;;  %v2578_v36 = vld [vmem:[#allocation2 + $0x38] sm:$0xff]  ;;  %v2228_v37 = vadd.f32 %v2200_v34, %v2115_v33  ;;  %v2211_v32 = vld [vmem:[#allocation2 + $0xa0] sm:$0xff] }
 0x185   : > { %2633 = vst.msk [vmem:[#allocation2 + $0x30] sm:$0xff] %vm492_vm4, %v2605_v26  ;;  %2258 = vst.msk [vmem:[#allocation2 + $0x58] sm:$0xff] %vm492_vm4, %v2230_v63  ;;  %v2606_v40 = vadd.f32 %v4090_v13, %v2578_v36  ;;  %v2576_v41 = vld [vmem:[#allocation2 + $0x28] sm:$0xff]  ;;  %v2214_v36 = vld [vmem:[#allocation2 + $0xb8] sm:$0xff] }
 0x186   : > { %2631 = vst.msk [vmem:[#allocation2 + $0x20] sm:$0xff] %vm492_vm4, %v2603_v35  ;;  %2256 = vst.msk [vmem:[#allocation2 + $0x48] sm:$0xff] %vm492_vm4, %v2228_v37  ;;  %v2604_v59 = vadd.f32 %v2576_v41, %v2479_v31 }
 0x187   : > { %2634 = vst.msk [vmem:[#allocation2 + $0x38] sm:$0xff] %vm492_vm4, %v2606_v40  ;;  %v4093_v43 = vpop.f32.mrb[80].mxu0 }
 0x188   : > { %2632 = vst.msk [vmem:[#allocation2 + $0x28] sm:$0xff] %vm492_vm4, %v2604_v59  ;;  %v4067_v0 = vpop.f32.mrb[80].mxu1  ;;  %v2492_v5 = vpop.f32.mrb[81].mxu0 }
 0x189   : > { %v2233_v45 = vadd.f32 %v4067_v0, %v2205_v44  ;;  %v2128_v46 = vpop.f32.mrb[81].mxu1  ;;  %v4094_v1 = vpop.f32.mrb[82].mxu0  ;;  %v2212_v0 = vld [vmem:[#allocation2 + $0xa8] sm:$0xff] }
 0x18a   : > { %v2581_v48 = vld [vmem:[#allocation2 + $0x50] sm:$0xff]  ;;  %v2231_v6 = vadd.f32 %v2203_v9, %v2128_v46  ;;  %v4068_v8 = vpop.f32.mrb[82].mxu1  ;;  %v2495_v50 = vpop.f32.mrb[83].mxu0 }
 0x18b   : > { %2261 = vst.msk [vmem:[#allocation2 + $0x70] sm:$0xff] %vm492_vm4, %v2233_v45  ;;  %v2609_v24 = vadd.f32 %v4093_v43, %v2581_v48  ;;  %v2579_v51 = vld [vmem:[#allocation2 + $0x40] sm:$0xff]  ;;  %v2234_v54 = vadd.f32 %v4068_v8, %v2206_v12  ;;  %v2131_v23 = vpop.f32.mrb[83].mxu1  ;;  %v2217_v8 = vld [vmem:[#allocation2 + $0xd0] sm:$0xff] }
 0x18c   : > { %2259 = vst.msk [vmem:[#allocation2 + $0x60] sm:$0xff] %vm492_vm4, %v2231_v6  ;;  %v2607_v52 = vadd.f32 %v2579_v51, %v2492_v5  ;;  %v2582_v56 = vld [vmem:[#allocation2 + $0x58] sm:$0xff]  ;;  %v2232_v39 = vadd.f32 %v2204_v28, %v2131_v23  ;;  %v2215_v51 = vld [vmem:[#allocation2 + $0xc0] sm:$0xff] }
 0x18d   : > { %2637 = vst.msk [vmem:[#allocation2 + $0x50] sm:$0xff] %vm492_vm4, %v2609_v24  ;;  %2262 = vst.msk [vmem:[#allocation2 + $0x78] sm:$0xff] %vm492_vm4, %v2234_v54  ;;  %v2610_v57 = vadd.f32 %v4094_v1, %v2582_v56  ;;  %v2580_v38 = vld [vmem:[#allocation2 + $0x48] sm:$0xff]  ;;  %v2218_v56 = vld [vmem:[#allocation2 + $0xd8] sm:$0xff] }
 0x18e   : > { %2635 = vst.msk [vmem:[#allocation2 + $0x40] sm:$0xff] %vm492_vm4, %v2607_v52  ;;  %2260 = vst.msk [vmem:[#allocation2 + $0x68] sm:$0xff] %vm492_vm4, %v2232_v39  ;;  %v2608_v42 = vadd.f32 %v2580_v38, %v2495_v50 }
 0x18f   : > { %2638 = vst.msk [vmem:[#allocation2 + $0x58] sm:$0xff] %vm492_vm4, %v2610_v57  ;;  %v4097_v16 = vpop.f32.mrb[84].mxu0 }
 0x190   : > { %2636 = vst.msk [vmem:[#allocation2 + $0x48] sm:$0xff] %vm492_vm4, %v2608_v42  ;;  %v4071_v61 = vpop.f32.mrb[84].mxu1  ;;  %v2508_v53 = vpop.f32.mrb[85].mxu0 }
 0x191   : > { %v2237_v3 = vadd.f32 %v4071_v61, %v2209_v49  ;;  %v2144_v25 = vpop.f32.mrb[85].mxu1  ;;  %v4098_v21 = vpop.f32.mrb[86].mxu0  ;;  %v2216_v61 = vld [vmem:[#allocation2 + $0xc8] sm:$0xff] }
 0x192   : > { %v2585_v60 = vld [vmem:[#allocation2 + $0x70] sm:$0xff]  ;;  %v2235_v2 = vadd.f32 %v2207_v4, %v2144_v25  ;;  %v4072_v55 = vpop.f32.mrb[86].mxu1  ;;  %v2511_v58 = vpop.f32.mrb[87].mxu0 }
 0x193   : > { %2265 = vst.msk [vmem:[#allocation2 + $0x90] sm:$0xff] %vm492_vm4, %v2237_v3  ;;  %v2613_v7 = vadd.f32 %v4097_v16, %v2585_v60  ;;  %v2583_v10 = vld [vmem:[#allocation2 + $0x60] sm:$0xff]  ;;  %v2238_v14 = vadd.f32 %v4072_v55, %v2210_v18  ;;  %v2147_v15 = vpop.f32.mrb[87].mxu1  ;;  %v2954_v55 = vld [vmem:[#allocation2 + $0x10] sm:$0xff] }
 0x194   : > { %2263 = vst.msk [vmem:[#allocation2 + $0x80] sm:$0xff] %vm492_vm4, %v2235_v2  ;;  %v2611_v11 = vadd.f32 %v2583_v10, %v2508_v53  ;;  %v2586_v19 = vld [vmem:[#allocation2 + $0x78] sm:$0xff]  ;;  %v2236_v20 = vadd.f32 %v2208_v17, %v2147_v15  ;;  %v2952_v10 = vld [vmem:[#allocation2] sm:$0xff] }
 0x195   : > { %2641 = vst.msk [vmem:[#allocation2 + $0x70] sm:$0xff] %vm492_vm4, %v2613_v7  ;;  %2266 = vst.msk [vmem:[#allocation2 + $0x98] sm:$0xff] %vm492_vm4, %v2238_v14  ;;  %v2614_v27 = vadd.f32 %v4098_v21, %v2586_v19  ;;  %v2584_v47 = vld [vmem:[#allocation2 + $0x68] sm:$0xff]  ;;  %v2955_v19 = vld [vmem:[#allocation2 + $0x18] sm:$0xff] }
 0x196   : > { %2639 = vst.msk [vmem:[#allocation2 + $0x60] sm:$0xff] %vm492_vm4, %v2611_v11  ;;  %2264 = vst.msk [vmem:[#allocation2 + $0x88] sm:$0xff] %vm492_vm4, %v2236_v20  ;;  %v2612_v13 = vadd.f32 %v2584_v47, %v2511_v58 }
 0x197   : > { %2642 = vst.msk [vmem:[#allocation2 + $0x78] sm:$0xff] %vm492_vm4, %v2614_v27  ;;  %v4101_v29 = vpop.f32.mrb[88].mxu0 }
 0x198   : > { %2640 = vst.msk [vmem:[#allocation2 + $0x68] sm:$0xff] %vm492_vm4, %v2612_v13  ;;  %v4075_v62 = vpop.f32.mrb[88].mxu1  ;;  %v2524_v22 = vpop.f32.mrb[89].mxu0 }
 0x199   : > { %v2241_v31 = vadd.f32 %v4075_v62, %v2213_v30  ;;  %v2160_v26 = vpop.f32.mrb[89].mxu1  ;;  %v4102_v63 = vpop.f32.mrb[90].mxu0  ;;  %v2953_v62 = vld [vmem:[#allocation2 + $0x8] sm:$0xff] }
 0x19a   : > { %v2589_v33 = vld [vmem:[#allocation2 + $0x90] sm:$0xff]  ;;  %v2239_v34 = vadd.f32 %v2211_v32, %v2160_v26  ;;  %v4076_v35 = vpop.f32.mrb[90].mxu1  ;;  %v2527_v37 = vpop.f32.mrb[91].mxu0 }
 0x19b   : > { %2269 = vst.msk [vmem:[#allocation2 + $0xb0] sm:$0xff] %vm492_vm4, %v2241_v31  ;;  %v2617_v40 = vadd.f32 %v4101_v29, %v2589_v33  ;;  %v2587_v41 = vld [vmem:[#allocation2 + $0x80] sm:$0xff]  ;;  %v2242_v59 = vadd.f32 %v4076_v35, %v2214_v36  ;;  %v2163_v43 = vpop.f32.mrb[91].mxu1  ;;  %v2958_v35 = vld [vmem:[#allocation2 + $0x30] sm:$0xff] }
 0x19c   : > { %2267 = vst.msk [vmem:[#allocation2 + $0xa0] sm:$0xff] %vm492_vm4, %v2239_v34  ;;  %v2615_v44 = vadd.f32 %v2587_v41, %v2524_v22  ;;  %v2590_v5 = vld [vmem:[#allocation2 + $0x98] sm:$0xff]  ;;  %v2240_v45 = vadd.f32 %v2212_v0, %v2163_v43  ;;  %v2956_v41 = vld [vmem:[#allocation2 + $0x20] sm:$0xff] }
 0x19d   : > { %2645 = vst.msk [vmem:[#allocation2 + $0x90] sm:$0xff] %vm492_vm4, %v2617_v40  ;;  %2270 = vst.msk [vmem:[#allocation2 + $0xb8] sm:$0xff] %vm492_vm4, %v2242_v59  ;;  %v2618_v46 = vadd.f32 %v4102_v63, %v2590_v5  ;;  %v2588_v9 = vld [vmem:[#allocation2 + $0x88] sm:$0xff]  ;;  %v2959_v5 = vld [vmem:[#allocation2 + $0x38] sm:$0xff] }
 0x19e   : > { %2643 = vst.msk [vmem:[#allocation2 + $0x80] sm:$0xff] %vm492_vm4, %v2615_v44  ;;  %2268 = vst.msk [vmem:[#allocation2 + $0xa8] sm:$0xff] %vm492_vm4, %v2240_v45  ;;  %v2616_v1 = vadd.f32 %v2588_v9, %v2527_v37 }
 0x19f   : > { %2646 = vst.msk [vmem:[#allocation2 + $0x98] sm:$0xff] %vm492_vm4, %v2618_v46  ;;  %v4105_v48 = vpop.f32.mrb[92].mxu0 }
 0x1a0   : > { %2644 = vst.msk [vmem:[#allocation2 + $0x88] sm:$0xff] %vm492_vm4, %v2616_v1  ;;  %v4079_v6 = vpop.f32.mrb[92].mxu1  ;;  %v2540_v12 = vpop.f32.mrb[93].mxu0 }
 0x1a1   : > { %v2245_v50 = vadd.f32 %v4079_v6, %v2217_v8  ;;  %v2176_v24 = vpop.f32.mrb[93].mxu1  ;;  %v4106_v54 = vpop.f32.mrb[94].mxu0  ;;  %v2957_v6 = vld [vmem:[#allocation2 + $0x28] sm:$0xff] }
 0x1a2   : > { %v2593_v23 = vld [vmem:[#allocation2 + $0xb0] sm:$0xff]  ;;  %v2243_v28 = vadd.f32 %v2215_v51, %v2176_v24  ;;  %v4080_v52 = vpop.f32.mrb[94].mxu1  ;;  %v2543_v39 = vpop.f32.mrb[95].mxu0 }
 0x1a3   : > { %2273 = vst.msk [vmem:[#allocation2 + $0xd0] sm:$0xff] %vm492_vm4, %v2245_v50  ;;  %v2621_v57 = vadd.f32 %v4105_v48, %v2593_v23  ;;  %v2591_v38 = vld [vmem:[#allocation2 + $0xa0] sm:$0xff]  ;;  %v2246_v42 = vadd.f32 %v4080_v52, %v2218_v56  ;;  %v2179_v16 = vpop.f32.mrb[95].mxu1  ;;  %v2962_v52 = vld [vmem:[#allocation2 + $0x50] sm:$0xff] }
 0x1a4   : > { %2271 = vst.msk [vmem:[#allocation2 + $0xc0] sm:$0xff] %vm492_vm4, %v2243_v28  ;;  %v2619_v49 = vadd.f32 %v2591_v38, %v2540_v12  ;;  %v2594_v53 = vld [vmem:[#allocation2 + $0xb8] sm:$0xff]  ;;  %v2244_v3 = vadd.f32 %v2216_v61, %v2179_v16  ;;  %v2960_v38 = vld [vmem:[#allocation2 + $0x40] sm:$0xff] }
 0x1a5   : > { %2649 = vst.msk [vmem:[#allocation2 + $0xb0] sm:$0xff] %vm492_vm4, %v2621_v57  ;;  %2274 = vst.msk [vmem:[#allocation2 + $0xd8] sm:$0xff] %vm492_vm4, %v2246_v42  ;;  %v2622_v25 = vadd.f32 %v4106_v54, %v2594_v53  ;;  %v2592_v4 = vld [vmem:[#allocation2 + $0xa8] sm:$0xff]  ;;  %v5111_v16 = vld [vmem:[%s5257_s2] ss:$0 sm:$0xff] }
 0x1a6   : > { %2647 = vst.msk [vmem:[#allocation2 + $0xa0] sm:$0xff] %vm492_vm4, %v2619_v49  ;;  %2272 = vst.msk [vmem:[#allocation2 + $0xc8] sm:$0xff] %vm492_vm4, %v2244_v3  ;;  %v2620_v21 = vadd.f32 %v2592_v4, %v2543_v39  ;;  %v2963_v3 = vld [vmem:[#allocation2 + $0x58] sm:$0xff] }
 0x1a7   : > { %2650 = vst.msk [vmem:[#allocation2 + $0xb8] sm:$0xff] %vm492_vm4, %v2622_v25  ;;  %v4109_v60 = vpop.f32.mrb[96].mxu0 }
 0x1a8   : > { %2648 = vst.msk [vmem:[#allocation2 + $0xa8] sm:$0xff] %vm492_vm4, %v2620_v21  ;;  %v4115_v2 = vpop.f32.mrb[96].mxu1  ;;  %v2556_v18 = vpop.f32.mrb[97].mxu0 }
 0x1a9   : > { %v2982_v58 = vadd.f32 %v4115_v2, %v2954_v55  ;;  %v2841_v7 = vpop.f32.mrb[97].mxu1  ;;  %v4110_v14 = vpop.f32.mrb[98].mxu0  ;;  %v2961_v55 = vld [vmem:[#allocation2 + $0x48] sm:$0xff] }
 0x1aa   : > { %v2597_v15 = vld [vmem:[#allocation2 + $0xd0] sm:$0xff]  ;;  %v2980_v17 = vadd.f32 %v2952_v10, %v2841_v7  ;;  %v4116_v11 = vpop.f32.mrb[98].mxu1  ;;  %v2559_v20 = vpop.f32.mrb[99].mxu0 }
 0x1ab   : > { %v2625_v27 = vadd.f32 %v4109_v60, %v2597_v15  ;;  %3010 = vst.msk [vmem:[#allocation2 + $0x10] sm:$0xff] %vm492_vm4, %v2982_v58  ;;  %v2595_v47 = vld [vmem:[#allocation2 + $0xc0] sm:$0xff]  ;;  %v2983_v13 = vadd.f32 %v4116_v11, %v2955_v19  ;;  %v2844_v29 = vpop.f32.mrb[99].mxu1 }
 0x1ac   : > { %v2623_v30 = vadd.f32 %v2595_v47, %v2556_v18  ;;  %3008 = vst.msk [vmem:[#allocation2] sm:$0xff] %vm492_vm4, %v2980_v17  ;;  %v2598_v22 = vld [vmem:[#allocation2 + $0xd8] sm:$0xff]  ;;  %v2981_v31 = vadd.f32 %v2953_v62, %v2844_v29 }
 0x1ad   : > { %2653 = vst.msk [vmem:[#allocation2 + $0xd0] sm:$0xff] %vm492_vm4, %v2625_v27  ;;  %v2626_v26 = vadd.f32 %v4110_v14, %v2598_v22  ;;  %3011 = vst.msk [vmem:[#allocation2 + $0x18] sm:$0xff] %vm492_vm4, %v2983_v13  ;;  %v2596_v32 = vld [vmem:[#allocation2 + $0xc8] sm:$0xff]  ;;  %v2966_v22 = vld [vmem:[#allocation2 + $0x70] sm:$0xff] }
 0x1ae   : > { %2651 = vst.msk [vmem:[#allocation2 + $0xc0] sm:$0xff] %vm492_vm4, %v2623_v30  ;;  %v2624_v63 = vadd.f32 %v2596_v32, %v2559_v20  ;;  %3009 = vst.msk [vmem:[#allocation2 + $0x8] sm:$0xff] %vm492_vm4, %v2981_v31 }
 0x1af   : > { %2654 = vst.msk [vmem:[#allocation2 + $0xd8] sm:$0xff] %vm492_vm4, %v2626_v26  ;;  %v4145_v33 = vpop.f32.mrb[100].mxu0 }
 0x1b0   : > { %2652 = vst.msk [vmem:[#allocation2 + $0xc8] sm:$0xff] %vm492_vm4, %v2624_v63  ;;  %v4119_v34 = vpop.f32.mrb[100].mxu1  ;;  %v3146_v36 = vpop.f32.mrb[101].mxu0  ;;  %v2964_v63 = vld [vmem:[#allocation2 + $0x60] sm:$0xff] }
 0x1b1   : > { %v2986_v37 = vadd.f32 %v4119_v34, %v2958_v35  ;;  %v2857_v40 = vpop.f32.mrb[101].mxu1  ;;  %v4146_v59 = vpop.f32.mrb[102].mxu0 }
 0x1b2   : > { %v3259_v43 = vld [vmem:[#allocation2 + $0x10] sm:$0xff]  ;;  %v2984_v0 = vadd.f32 %v2956_v41, %v2857_v40  ;;  %v4120_v44 = vpop.f32.mrb[102].mxu1  ;;  %v3149_v45 = vpop.f32.mrb[103].mxu0 }
 0x1b3   : > { %3014 = vst.msk [vmem:[#allocation2 + $0x30] sm:$0xff] %vm492_vm4, %v2986_v37  ;;  %v3287_v46 = vadd.f32 %v4145_v33, %v3259_v43  ;;  %v3257_v9 = vld [vmem:[#allocation2] sm:$0xff]  ;;  %v2987_v1 = vadd.f32 %v4120_v44, %v2959_v5  ;;  %v2860_v48 = vpop.f32.mrb[103].mxu1  ;;  %v2967_v37 = vld [vmem:[#allocation2 + $0x78] sm:$0xff]  ;;  %v2965_v44 = vld [vmem:[#allocation2 + $0x68] sm:$0xff] }
 0x1b4   : > { %3012 = vst.msk [vmem:[#allocation2 + $0x20] sm:$0xff] %vm492_vm4, %v2984_v0  ;;  %v3285_v8 = vadd.f32 %v3257_v9, %v3146_v36  ;;  %v3260_v12 = vld [vmem:[#allocation2 + $0x18] sm:$0xff]  ;;  %v2985_v50 = vadd.f32 %v2957_v6, %v2860_v48 }
 0x1b5   : > { %3315 = vst.msk [vmem:[#allocation2 + $0x10] sm:$0xff] %vm492_vm4, %v3287_v46  ;;  %3015 = vst.msk [vmem:[#allocation2 + $0x38] sm:$0xff] %vm492_vm4, %v2987_v1  ;;  %v3288_v24 = vadd.f32 %v4146_v59, %v3260_v12  ;;  %v3258_v51 = vld [vmem:[#allocation2 + $0x8] sm:$0xff] }
 0x1b6   : > { %3313 = vst.msk [vmem:[#allocation2] sm:$0xff] %vm492_vm4, %v3285_v8  ;;  %3013 = vst.msk [vmem:[#allocation2 + $0x28] sm:$0xff] %vm492_vm4, %v2985_v50  ;;  %v3286_v54 = vadd.f32 %v3258_v51, %v3149_v45 }
 0x1b7   : > { %3316 = vst.msk [vmem:[#allocation2 + $0x18] sm:$0xff] %vm492_vm4, %v3288_v24  ;;  %v4149_v23 = vpop.f32.mrb[104].mxu0 }
 0x1b8   : > { %3314 = vst.msk [vmem:[#allocation2 + $0x8] sm:$0xff] %vm492_vm4, %v3286_v54  ;;  %v4123_v28 = vpop.f32.mrb[104].mxu1  ;;  %v3162_v56 = vpop.f32.mrb[105].mxu0 }
 0x1b9   : > { %v2990_v39 = vadd.f32 %v4123_v28, %v2962_v52  ;;  %v2873_v57 = vpop.f32.mrb[105].mxu1  ;;  %v4150_v42 = vpop.f32.mrb[106].mxu0 }
 0x1ba   : > { %v3263_v61 = vld [vmem:[#allocation2 + $0x30] sm:$0xff]  ;;  %v2988_v49 = vadd.f32 %v2960_v38, %v2873_v57  ;;  %v4124_v53 = vpop.f32.mrb[106].mxu1  ;;  %v3165_v25 = vpop.f32.mrb[107].mxu0 }
 0x1bb   : > { %3018 = vst.msk [vmem:[#allocation2 + $0x50] sm:$0xff] %vm492_vm4, %v2990_v39  ;;  %v3291_v4 = vadd.f32 %v4149_v23, %v3263_v61  ;;  %v3261_v21 = vld [vmem:[#allocation2 + $0x20] sm:$0xff]  ;;  %v2991_v60 = vadd.f32 %v4124_v53, %v2963_v3  ;;  %v2876_v2 = vpop.f32.mrb[107].mxu1 }
 0x1bc   : > { %v3343_v18 = vld [vmem:[#allocation2 + $0x10] sm:$0xff]  ;;  %3016 = vst.msk [vmem:[#allocation2 + $0x40] sm:$0xff] %vm492_vm4, %v2988_v49  ;;  %v3289_v58 = vadd.f32 %v3261_v21, %v3162_v56  ;;  %v3264_v7 = vld [vmem:[#allocation2 + $0x38] sm:$0xff]  ;;  %v2989_v10 = vadd.f32 %v2961_v55, %v2876_v2 }
 0x1bd   : > { %v3378_v14 = vadd.f32 %v5111_v16, %v3343_v18  ;;  %v3341_v15 = vld [vmem:[#allocation2] sm:$0xff]  ;;  %3319 = vst.msk [vmem:[#allocation2 + $0x30] sm:$0xff] %vm492_vm4, %v3291_v4  ;;  %3019 = vst.msk [vmem:[#allocation2 + $0x58] sm:$0xff] %vm492_vm4, %v2991_v60  ;;  %v3292_v17 = vadd.f32 %v4150_v42, %v3264_v7  ;;  %v3262_v11 = vld [vmem:[#allocation2 + $0x28] sm:$0xff] }
 0x1be   : > { %v3376_v19 = vadd.f32 %v5111_v16, %v3341_v15  ;;  %v3344_v20 = vld [vmem:[#allocation2 + $0x18] sm:$0xff]  ;;  %3317 = vst.msk [vmem:[#allocation2 + $0x20] sm:$0xff] %vm492_vm4, %v3289_v58  ;;  %3017 = vst.msk [vmem:[#allocation2 + $0x48] sm:$0xff] %vm492_vm4, %v2989_v10  ;;  %v3290_v27 = vadd.f32 %v3262_v11, %v3165_v25  ;;  %v2970_v56 = vld [vmem:[#allocation2 + $0x90] sm:$0xff] }
 0x1bf   : > { %3406 = vst.msk [vmem:[%s5117_s19 + $0x10] sm:$0xff] %vm492_vm4, %v3378_v14  ;;  %v3379_v47 = vadd.f32 %v5111_v16, %v3344_v20  ;;  %v3342_v13 = vld [vmem:[#allocation2 + $0x8] sm:$0xff]  ;;  %3320 = vst.msk [vmem:[#allocation2 + $0x38] sm:$0xff] %vm492_vm4, %v3292_v17  ;;  %v4153_v29 = vpop.f32.mrb[108].mxu0  ;;  %v2968_v42 = vld [vmem:[#allocation2 + $0x80] sm:$0xff] }
 0x1c0   : > { %3404 = vst.msk [vmem:[%s5117_s19] sm:$0xff] %vm492_vm4, %v3376_v19  ;;  %v3377_v62 = vadd.f32 %v5111_v16, %v3342_v13  ;;  %3318 = vst.msk [vmem:[#allocation2 + $0x28] sm:$0xff] %vm492_vm4, %v3290_v27  ;;  %v4127_v30 = vpop.f32.mrb[108].mxu1  ;;  %v3178_v31 = vpop.f32.mrb[109].mxu0  ;;  %v2971_v25 = vld [vmem:[#allocation2 + $0x98] sm:$0xff]  ;;  %v2969_v18 = vld [vmem:[#allocation2 + $0x88] sm:$0xff] }
 0x1c1   : > { %3407 = vst.msk [vmem:[%s5117_s19 + $0x18] sm:$0xff] %vm492_vm4, %v3379_v47  ;;  %v2994_v26 = vadd.f32 %v4127_v30, %v2966_v22  ;;  %v2889_v32 = vpop.f32.mrb[109].mxu1  ;;  %v4154_v33 = vpop.f32.mrb[110].mxu0 }
 0x1c2   : > { %3405 = vst.msk [vmem:[%s5117_s19 + $0x8] sm:$0xff] %vm492_vm4, %v3377_v62  ;;  %v3267_v34 = vld [vmem:[#allocation2 + $0x50] sm:$0xff]  ;;  %v2992_v35 = vadd.f32 %v2964_v63, %v2889_v32  ;;  %v4128_v36 = vpop.f32.mrb[110].mxu1  ;;  %v3181_v40 = vpop.f32.mrb[111].mxu0 }
 0x1c3   : > { %3022 = vst.msk [vmem:[#allocation2 + $0x70] sm:$0xff] %vm492_vm4, %v2994_v26  ;;  %v3295_v41 = vadd.f32 %v4153_v29, %v3267_v34  ;;  %v3265_v59 = vld [vmem:[#allocation2 + $0x40] sm:$0xff]  ;;  %v2995_v43 = vadd.f32 %v4128_v36, %v2967_v37  ;;  %v2892_v0 = vpop.f32.mrb[111].mxu1 }
 0x1c4   : > { %v3347_v5 = vld [vmem:[#allocation2 + $0x30] sm:$0xff]  ;;  %3020 = vst.msk [vmem:[#allocation2 + $0x60] sm:$0xff] %vm492_vm4, %v2992_v35  ;;  %v3293_v45 = vadd.f32 %v3265_v59, %v3178_v31  ;;  %v3268_v46 = vld [vmem:[#allocation2 + $0x58] sm:$0xff]  ;;  %v2993_v9 = vadd.f32 %v2965_v44, %v2892_v0 }
 0x1c5   : > { %v3382_v1 = vadd.f32 %v5111_v16, %v3347_v5  ;;  %v3345_v48 = vld [vmem:[#allocation2 + $0x20] sm:$0xff]  ;;  %3323 = vst.msk [vmem:[#allocation2 + $0x50] sm:$0xff] %vm492_vm4, %v3295_v41  ;;  %3023 = vst.msk [vmem:[#allocation2 + $0x78] sm:$0xff] %vm492_vm4, %v2995_v43  ;;  %v3296_v6 = vadd.f32 %v4154_v33, %v3268_v46  ;;  %v3266_v8 = vld [vmem:[#allocation2 + $0x48] sm:$0xff] }
 0x1c6   : > { %v3380_v12 = vadd.f32 %v5111_v16, %v3345_v48  ;;  %v3348_v50 = vld [vmem:[#allocation2 + $0x38] sm:$0xff]  ;;  %3321 = vst.msk [vmem:[#allocation2 + $0x40] sm:$0xff] %vm492_vm4, %v3293_v45  ;;  %3021 = vst.msk [vmem:[#allocation2 + $0x68] sm:$0xff] %vm492_vm4, %v2993_v9  ;;  %v3294_v24 = vadd.f32 %v3266_v8, %v3181_v40  ;;  %v2974_v31 = vld [vmem:[#allocation2 + $0xb0] sm:$0xff] }
 0x1c7   : > { %3410 = vst.msk [vmem:[%s5117_s19 + $0x30] sm:$0xff] %vm492_vm4, %v3382_v1  ;;  %v3383_v51 = vadd.f32 %v5111_v16, %v3348_v50  ;;  %v3346_v54 = vld [vmem:[#allocation2 + $0x28] sm:$0xff]  ;;  %3324 = vst.msk [vmem:[#allocation2 + $0x58] sm:$0xff] %vm492_vm4, %v3296_v6  ;;  %v4157_v23 = vpop.f32.mrb[112].mxu0  ;;  %v2972_v33 = vld [vmem:[#allocation2 + $0xa0] sm:$0xff] }
 0x1c8   : > { %3408 = vst.msk [vmem:[%s5117_s19 + $0x20] sm:$0xff] %vm492_vm4, %v3380_v12  ;;  %v3381_v28 = vadd.f32 %v5111_v16, %v3346_v54  ;;  %3322 = vst.msk [vmem:[#allocation2 + $0x48] sm:$0xff] %vm492_vm4, %v3294_v24  ;;  %v4131_v52 = vpop.f32.mrb[112].mxu1  ;;  %v3194_v39 = vpop.f32.mrb[113].mxu0  ;;  %v2975_v40 = vld [vmem:[#allocation2 + $0xb8] sm:$0xff]  ;;  %v2973_v5 = vld [vmem:[#allocation2 + $0xa8] sm:$0xff] }
 0x1c9   : > { %3411 = vst.msk [vmem:[%s5117_s19 + $0x38] sm:$0xff] %vm492_vm4, %v3383_v51  ;;  %v2998_v57 = vadd.f32 %v4131_v52, %v2970_v56  ;;  %v2905_v38 = vpop.f32.mrb[113].mxu1  ;;  %v4158_v61 = vpop.f32.mrb[114].mxu0 }
 0x1ca   : > { %3409 = vst.msk [vmem:[%s5117_s19 + $0x28] sm:$0xff] %vm492_vm4, %v3381_v28  ;;  %v3271_v49 = vld [vmem:[#allocation2 + $0x70] sm:$0xff]  ;;  %v2996_v53 = vadd.f32 %v2968_v42, %v2905_v38  ;;  %v4132_v3 = vpop.f32.mrb[114].mxu1  ;;  %v3197_v4 = vpop.f32.mrb[115].mxu0 }
 0x1cb   : > { %3026 = vst.msk [vmem:[#allocation2 + $0x90] sm:$0xff] %vm492_vm4, %v2998_v57  ;;  %v3299_v21 = vadd.f32 %v4157_v23, %v3271_v49  ;;  %v3269_v60 = vld [vmem:[#allocation2 + $0x60] sm:$0xff]  ;;  %v2999_v2 = vadd.f32 %v4132_v3, %v2971_v25  ;;  %v2908_v55 = vpop.f32.mrb[115].mxu1 }
 0x1cc   : > { %v3351_v58 = vld [vmem:[#allocation2 + $0x50] sm:$0xff]  ;;  %3024 = vst.msk [vmem:[#allocation2 + $0x80] sm:$0xff] %vm492_vm4, %v2996_v53  ;;  %v3297_v7 = vadd.f32 %v3269_v60, %v3194_v39  ;;  %v3272_v10 = vld [vmem:[#allocation2 + $0x78] sm:$0xff]  ;;  %v2997_v14 = vadd.f32 %v2969_v18, %v2908_v55 }
 0x1cd   : > { %v3386_v15 = vadd.f32 %v5111_v16, %v3351_v58  ;;  %v3349_v17 = vld [vmem:[#allocation2 + $0x40] sm:$0xff]  ;;  %3327 = vst.msk [vmem:[#allocation2 + $0x70] sm:$0xff] %vm492_vm4, %v3299_v21  ;;  %3027 = vst.msk [vmem:[#allocation2 + $0x98] sm:$0xff] %vm492_vm4, %v2999_v2  ;;  %v3300_v11 = vadd.f32 %v4158_v61, %v3272_v10  ;;  %v3270_v19 = vld [vmem:[#allocation2 + $0x68] sm:$0xff] }
 0x1ce   : > { %v3384_v20 = vadd.f32 %v5111_v16, %v3349_v17  ;;  %v3352_v27 = vld [vmem:[#allocation2 + $0x58] sm:$0xff]  ;;  %3325 = vst.msk [vmem:[#allocation2 + $0x60] sm:$0xff] %vm492_vm4, %v3297_v7  ;;  %3025 = vst.msk [vmem:[#allocation2 + $0x88] sm:$0xff] %vm492_vm4, %v2997_v14  ;;  %v3298_v47 = vadd.f32 %v3270_v19, %v3197_v4  ;;  %v2978_v39 = vld [vmem:[#allocation2 + $0xd0] sm:$0xff] }
 0x1cf   : > { %3414 = vst.msk [vmem:[%s5117_s19 + $0x50] sm:$0xff] %vm492_vm4, %v3386_v15  ;;  %v3387_v13 = vadd.f32 %v5111_v16, %v3352_v27  ;;  %v3350_v29 = vld [vmem:[#allocation2 + $0x48] sm:$0xff]  ;;  %3328 = vst.msk [vmem:[#allocation2 + $0x78] sm:$0xff] %vm492_vm4, %v3300_v11  ;;  %v4161_v62 = vpop.f32.mrb[116].mxu0  ;;  %v2976_v61 = vld [vmem:[#allocation2 + $0xc0] sm:$0xff] }
 0x1d0   : > { %3412 = vst.msk [vmem:[%s5117_s19 + $0x40] sm:$0xff] %vm492_vm4, %v3384_v20  ;;  %v3385_v30 = vadd.f32 %v5111_v16, %v3350_v29  ;;  %3326 = vst.msk [vmem:[#allocation2 + $0x68] sm:$0xff] %vm492_vm4, %v3298_v47  ;;  %v4135_v22 = vpop.f32.mrb[116].mxu1  ;;  %v3210_v26 = vpop.f32.mrb[117].mxu0  ;;  %v2979_v4 = vld [vmem:[#allocation2 + $0xd8] sm:$0xff]  ;;  %v2977_v58 = vld [vmem:[#allocation2 + $0xc8] sm:$0xff] }
 0x1d1   : > { %3415 = vst.msk [vmem:[%s5117_s19 + $0x58] sm:$0xff] %vm492_vm4, %v3387_v13  ;;  %v3002_v32 = vadd.f32 %v4135_v22, %v2974_v31  ;;  %v2921_v63 = vpop.f32.mrb[117].mxu1  ;;  %v4162_v34 = vpop.f32.mrb[118].mxu0 }
 0x1d2   : > { %3413 = vst.msk [vmem:[%s5117_s19 + $0x48] sm:$0xff] %vm492_vm4, %v3385_v30  ;;  %v3275_v35 = vld [vmem:[#allocation2 + $0x90] sm:$0xff]  ;;  %v3000_v36 = vadd.f32 %v2972_v33, %v2921_v63  ;;  %v4136_v37 = vpop.f32.mrb[118].mxu1  ;;  %v3213_v41 = vpop.f32.mrb[119].mxu0 }
 0x1d3   : > { %3030 = vst.msk [vmem:[#allocation2 + $0xb0] sm:$0xff] %vm492_vm4, %v3002_v32  ;;  %v3303_v59 = vadd.f32 %v4161_v62, %v3275_v35  ;;  %v3273_v43 = vld [vmem:[#allocation2 + $0x80] sm:$0xff]  ;;  %v3003_v0 = vadd.f32 %v4136_v37, %v2975_v40  ;;  %v2924_v44 = vpop.f32.mrb[119].mxu1 }
 0x1d4   : > { %v3355_v45 = vld [vmem:[#allocation2 + $0x70] sm:$0xff]  ;;  %3028 = vst.msk [vmem:[#allocation2 + $0xa0] sm:$0xff] %vm492_vm4, %v3000_v36  ;;  %v3301_v46 = vadd.f32 %v3273_v43, %v3210_v26  ;;  %v3276_v9 = vld [vmem:[#allocation2 + $0x98] sm:$0xff]  ;;  %v3001_v1 = vadd.f32 %v2973_v5, %v2924_v44 }
 0x1d5   : > { %v3390_v48 = vadd.f32 %v5111_v16, %v3355_v45  ;;  %v3353_v6 = vld [vmem:[#allocation2 + $0x60] sm:$0xff]  ;;  %3331 = vst.msk [vmem:[#allocation2 + $0x90] sm:$0xff] %vm492_vm4, %v3303_v59  ;;  %3031 = vst.msk [vmem:[#allocation2 + $0xb8] sm:$0xff] %vm492_vm4, %v3003_v0  ;;  %v3304_v8 = vadd.f32 %v4162_v34, %v3276_v9  ;;  %v3274_v12 = vld [vmem:[#allocation2 + $0x88] sm:$0xff] }
 0x1d6   : > { %v3388_v50 = vadd.f32 %v5111_v16, %v3353_v6  ;;  %v3356_v24 = vld [vmem:[#allocation2 + $0x78] sm:$0xff]  ;;  %3329 = vst.msk [vmem:[#allocation2 + $0x80] sm:$0xff] %vm492_vm4, %v3301_v46  ;;  %3029 = vst.msk [vmem:[#allocation2 + $0xa8] sm:$0xff] %vm492_vm4, %v3001_v1  ;;  %v3302_v51 = vadd.f32 %v3274_v12, %v3213_v41 }
 0x1d7   : > { %3418 = vst.msk [vmem:[%s5117_s19 + $0x70] sm:$0xff] %vm492_vm4, %v3390_v48  ;;  %v3391_v54 = vadd.f32 %v5111_v16, %v3356_v24  ;;  %v3354_v23 = vld [vmem:[#allocation2 + $0x68] sm:$0xff]  ;;  %3332 = vst.msk [vmem:[#allocation2 + $0x98] sm:$0xff] %vm492_vm4, %v3304_v8  ;;  %v4165_v28 = vpop.f32.mrb[120].mxu0 }
 0x1d8   : > { %3416 = vst.msk [vmem:[%s5117_s19 + $0x60] sm:$0xff] %vm492_vm4, %v3388_v50  ;;  %v3389_v52 = vadd.f32 %v5111_v16, %v3354_v23  ;;  %3330 = vst.msk [vmem:[#allocation2 + $0x88] sm:$0xff] %vm492_vm4, %v3302_v51  ;;  %v4139_v56 = vpop.f32.mrb[120].mxu1  ;;  %v3226_v57 = vpop.f32.mrb[121].mxu0 }
 0x1d9   : > { %3419 = vst.msk [vmem:[%s5117_s19 + $0x78] sm:$0xff] %vm492_vm4, %v3391_v54  ;;  %v3006_v38 = vadd.f32 %v4139_v56, %v2978_v39  ;;  %v2937_v42 = vpop.f32.mrb[121].mxu1  ;;  %v4166_v49 = vpop.f32.mrb[122].mxu0 }
 0x1da   : > { %3417 = vst.msk [vmem:[%s5117_s19 + $0x68] sm:$0xff] %vm492_vm4, %v3389_v52  ;;  %v3279_v53 = vld [vmem:[#allocation2 + $0xb0] sm:$0xff]  ;;  %v3004_v3 = vadd.f32 %v2976_v61, %v2937_v42  ;;  %v4140_v25 = vpop.f32.mrb[122].mxu1  ;;  %v3229_v21 = vpop.f32.mrb[123].mxu0 }
 0x1db   : > { %3034 = vst.msk [vmem:[#allocation2 + $0xd0] sm:$0xff] %vm492_vm4, %v3006_v38  ;;  %v3307_v60 = vadd.f32 %v4165_v28, %v3279_v53  ;;  %v3277_v2 = vld [vmem:[#allocation2 + $0xa0] sm:$0xff]  ;;  %v3007_v55 = vadd.f32 %v4140_v25, %v2979_v4  ;;  %v2940_v18 = vpop.f32.mrb[123].mxu1 }
 0x1dc   : > { %v3359_v7 = vld [vmem:[#allocation2 + $0x90] sm:$0xff]  ;;  %3032 = vst.msk [vmem:[#allocation2 + $0xc0] sm:$0xff] %vm492_vm4, %v3004_v3  ;;  %v3305_v10 = vadd.f32 %v3277_v2, %v3226_v57  ;;  %v3280_v14 = vld [vmem:[#allocation2 + $0xb8] sm:$0xff]  ;;  %v3005_v15 = vadd.f32 %v2977_v58, %v2940_v18 }
 0x1dd   : > { %v3394_v17 = vadd.f32 %v5111_v16, %v3359_v7  ;;  %v3357_v11 = vld [vmem:[#allocation2 + $0x80] sm:$0xff]  ;;  %3335 = vst.msk [vmem:[#allocation2 + $0xb0] sm:$0xff] %vm492_vm4, %v3307_v60  ;;  %3035 = vst.msk [vmem:[#allocation2 + $0xd8] sm:$0xff] %vm492_vm4, %v3007_v55  ;;  %v3308_v19 = vadd.f32 %v4166_v49, %v3280_v14  ;;  %v3278_v20 = vld [vmem:[#allocation2 + $0xa8] sm:$0xff] }
 0x1de   : > { %v3392_v27 = vadd.f32 %v5111_v16, %v3357_v11  ;;  %v3360_v47 = vld [vmem:[#allocation2 + $0x98] sm:$0xff]  ;;  %3333 = vst.msk [vmem:[#allocation2 + $0xa0] sm:$0xff] %vm492_vm4, %v3305_v10  ;;  %3033 = vst.msk [vmem:[#allocation2 + $0xc8] sm:$0xff] %vm492_vm4, %v3005_v15  ;;  %v3306_v13 = vadd.f32 %v3278_v20, %v3229_v21 }
 0x1df   : > { %3422 = vst.msk [vmem:[%s5117_s19 + $0x90] sm:$0xff] %vm492_vm4, %v3394_v17  ;;  %v3395_v29 = vadd.f32 %v5111_v16, %v3360_v47  ;;  %v3358_v62 = vld [vmem:[#allocation2 + $0x88] sm:$0xff]  ;;  %3336 = vst.msk [vmem:[#allocation2 + $0xb8] sm:$0xff] %vm492_vm4, %v3308_v19  ;;  %v4169_v30 = vpop.f32.mrb[124].mxu0 }
 0x1e0   : > { %3420 = vst.msk [vmem:[%s5117_s19 + $0x80] sm:$0xff] %vm492_vm4, %v3392_v27  ;;  %v3393_v22 = vadd.f32 %v5111_v16, %v3358_v62  ;;  %3334 = vst.msk [vmem:[#allocation2 + $0xa8] sm:$0xff] %vm492_vm4, %v3306_v13  ;;  %v3242_v31 = vpop.f32.mrb[125].mxu0 }
 0x1e1   : > { %3423 = vst.msk [vmem:[%s5117_s19 + $0x98] sm:$0xff] %vm492_vm4, %v3395_v29  ;;  %v4170_v26 = vpop.f32.mrb[126].mxu0 }
 0x1e2   : > { %3421 = vst.msk [vmem:[%s5117_s19 + $0x88] sm:$0xff] %vm492_vm4, %v3393_v22  ;;  %v3283_v32 = vld [vmem:[#allocation2 + $0xd0] sm:$0xff]  ;;  %v3245_v63 = vpop.f32.mrb[127].mxu0 }
 0x1e3   : > { %v3311_v33 = vadd.f32 %v4169_v30, %v3283_v32  ;;  %v3281_v34 = vld [vmem:[#allocation2 + $0xc0] sm:$0xff] }
 0x1e4   : > { %v3363_v35 = vld [vmem:[#allocation2 + $0xb0] sm:$0xff]  ;;  %v3309_v36 = vadd.f32 %v3281_v34, %v3242_v31  ;;  %v3284_v37 = vld [vmem:[#allocation2 + $0xd8] sm:$0xff] }
 0x1e5   : > { %v3398_v40 = vadd.f32 %v5111_v16, %v3363_v35  ;;  %v3361_v41 = vld [vmem:[#allocation2 + $0xa0] sm:$0xff]  ;;  %3339 = vst.msk [vmem:[#allocation2 + $0xd0] sm:$0xff] %vm492_vm4, %v3311_v33  ;;  %v3312_v59 = vadd.f32 %v4170_v26, %v3284_v37  ;;  %v3282_v43 = vld [vmem:[#allocation2 + $0xc8] sm:$0xff] }
 0x1e6   : > { %v3396_v0 = vadd.f32 %v5111_v16, %v3361_v41  ;;  %v3364_v44 = vld [vmem:[#allocation2 + $0xb8] sm:$0xff]  ;;  %3337 = vst.msk [vmem:[#allocation2 + $0xc0] sm:$0xff] %vm492_vm4, %v3309_v36  ;;  %v3310_v5 = vadd.f32 %v3282_v43, %v3245_v63 }
 0x1e7   : > { %3426 = vst.msk [vmem:[%s5117_s19 + $0xb0] sm:$0xff] %vm492_vm4, %v3398_v40  ;;  %v3399_v45 = vadd.f32 %v5111_v16, %v3364_v44  ;;  %v3362_v46 = vld [vmem:[#allocation2 + $0xa8] sm:$0xff]  ;;  %3340 = vst.msk [vmem:[#allocation2 + $0xd8] sm:$0xff] %vm492_vm4, %v3312_v59 }
 0x1e8   : > { %3424 = vst.msk [vmem:[%s5117_s19 + $0xa0] sm:$0xff] %vm492_vm4, %v3396_v0  ;;  %v3397_v9 = vadd.f32 %v5111_v16, %v3362_v46  ;;  %3338 = vst.msk [vmem:[#allocation2 + $0xc8] sm:$0xff] %vm492_vm4, %v3310_v5 }
 0x1e9   : > { %3427 = vst.msk [vmem:[%s5117_s19 + $0xb8] sm:$0xff] %vm492_vm4, %v3399_v45 }
 0x1ea   : > { %3425 = vst.msk [vmem:[%s5117_s19 + $0xa8] sm:$0xff] %vm492_vm4, %v3397_v9 }
 0x1ec   : > { %v3367_v1 = vld [vmem:[#allocation2 + $0xd0] sm:$0xff] }
 0x1ed   : > { %v3402_v48 = vadd.f32 %v5111_v16, %v3367_v1  ;;  %v3365_v6 = vld [vmem:[#allocation2 + $0xc0] sm:$0xff] }
 0x1ee   : > { %v3400_v8 = vadd.f32 %v5111_v16, %v3365_v6  ;;  %v3368_v12 = vld [vmem:[#allocation2 + $0xd8] sm:$0xff] }
 0x1ef   : > { %3430 = vst.msk [vmem:[%s5117_s19 + $0xd0] sm:$0xff] %vm492_vm4, %v3402_v48  ;;  %v3403_v50 = vadd.f32 %v5111_v16, %v3368_v12  ;;  %v3366_v24 = vld [vmem:[#allocation2 + $0xc8] sm:$0xff] }
 0x1f0   : > { %3428 = vst.msk [vmem:[%s5117_s19 + $0xc0] sm:$0xff] %vm492_vm4, %v3400_v8  ;;  %v3401_v51 = vadd.f32 %v5111_v16, %v3366_v24 }
 0x1f1   : > { %3431 = vst.msk [vmem:[%s5117_s19 + $0xd8] sm:$0xff] %vm492_vm4, %v3403_v50 }
 0x1f2   : > { %3429 = vst.msk [vmem:[%s5117_s19 + $0xc8] sm:$0xff] %vm492_vm4, %v3401_v51 }
 0x1f3 PF: > { %s13_s14 = sadd.s32 1, %s4276_s14   ;;  %s5259_s12 = smov %s4272_s13 }
 0x1f4   : > { %p10_p5 = scmp.ge.s32.totalorder %s13_s14, 4   ;;  %s5260_s13 = smov %s5262_s15 }
 0x1f6   :  { %12 = sbr.rel (!%p10_p5) target bundleno = 2 (0x2), region = 73 }

</bundles_post_ra>
